<compile_context>
chip_gen: v5e
topology: v5e:2x2
jax: 0.10.0
libtpu: 0.0.40
codegen_flags: <defaults>
</compile_context>

<pallas_src>
import jax
import jax.numpy as jnp
from jax.experimental import pallas as pl
from jax.experimental.pallas import tpu as pltpu


def _round_up(x, m):
    return (x + m - 1) // m * m


# ---------------------------------------------------------------------------
# Fused Conv3x3(pad=1) + BatchNorm(training-mode batch stats) + ReLU (+ fused
# 2x2 max-pool window maxima for the second conv).
#
# Slab layout: column  LEAD + n*Lfull + hp*Wp + wp  of a [C, Ltot] array holds
# padded pixel (hp, wp) of image n, where Hp = H+2, Wp = W+2, Lfull = Hp*Wp,
# LEAD = round_up(Wp+1, 128), Lout = round_up(N*Lfull, 128) and
# Ltot = LEAD + Lout + LEAD.  Output column m sits at slab column LEAD + m, so
# tap (i, j) of the 3x3 stencil reads the contiguous slice starting at
# LEAD + (i-1)*Wp + (j-1) + m.  The 128-aligned LEAD margins make the output
# store lane-dense and let conv1's slab feed conv2 without any re-padding.
# ---------------------------------------------------------------------------
def _make_conv_kernel(cin, lead, wp, lout, count, eps, pool):
    inv_count = 1.0 / float(count)

    def kernel(*refs):
        if pool:
            x_ref, w_ref, g_ref, b_ref, mask_ref, o_ref, q_ref, patch_ref = refs
        else:
            x_ref, w_ref, g_ref, b_ref, mask_ref, o_ref, patch_ref = refs

        # Stage the nine shifted tap slices into the [9*Cin, Lout] patches
        # scratch once; x slab + scratch stay resident across the Cout grid.
        @pl.when(pl.program_id(0) == 0)
        def _():
            for t in range(9):
                i, j = t // 3, t % 3
                start = lead + (i - 1) * wp + (j - 1)          # static offset
                patch_ref[t * cin:(t + 1) * cin, :] = x_ref[:, start:start + lout]

        # Single MXU matmul, K = 9*Cin, f32 accumulation.
        acc = jnp.dot(w_ref[...], patch_ref[...],
                      preferred_element_type=jnp.float32)      # [tc, Lout]

        # Training-mode BatchNorm over the `count` valid columns, then ReLU.
        # The conv bias cancels exactly under the batch-mean subtraction, so
        # it is folded away.  sum / sumsq are independent lane reductions.
        maskf = mask_ref[...].astype(jnp.float32)              # [1, Lout]
        am = acc * maskf
        s1 = jnp.sum(am, axis=1, keepdims=True)
        s2 = jnp.sum(am * acc, axis=1, keepdims=True)
        mean = s1 * inv_count
        var = s2 * inv_count - mean * mean                     # E[x^2]-mean^2
        scale = g_ref[...] * jax.lax.rsqrt(var + eps)          # EUP rsqrt
        y = jnp.maximum((acc - mean) * scale + b_ref[...], 0.0)

        tc = o_ref.shape[0]
        tail = o_ref.shape[1] - lead - lout
        o_ref[:, :lead] = jnp.zeros((tc, lead), o_ref.dtype)
        o_ref[:, lead + lout:] = jnp.zeros((tc, tail), o_ref.dtype)
        if pool:
            # Unmasked store (invalid columns are cropped by the caller), then
            # fuse the 2x2 pool: column m of q holds the max over the 2x2
            # window whose top-left sits at slab column lead+m; the caller
            # extracts the stride-2 interior columns.  All four reads hit the
            # slab we just wrote (still in VMEM).
            o_ref[:, lead:lead + lout] = y.astype(o_ref.dtype)
            a = o_ref[:, lead:lead + lout]
            b = o_ref[:, lead + 1:lead + 1 + lout]
            c = o_ref[:, lead + wp:lead + wp + lout]
            d = o_ref[:, lead + wp + 1:lead + wp + 1 + lout]
            q_ref[...] = jnp.maximum(jnp.maximum(a, b), jnp.maximum(c, d))
        else:
            # Masked store: zeroed ring columns serve as conv2's zero padding.
            o_ref[:, lead:lead + lout] = (y * maskf).astype(o_ref.dtype)

    return kernel


def conv3x3_bn_relu(x_slab, w2d, gamma, beta, mask, *, lead, wp, lout, count,
                    out_dtype, eps=1e-5, pool=False):
    """x_slab: [Cin, Ltot] bf16 slab; w2d: [Cout, 9*Cin] bf16."""
    cin, ltot = x_slab.shape
    cout, k = w2d.shape
    assert k == 9 * cin and ltot == lout + 2 * lead
    tc = cout if cout <= 128 else 128
    assert cout % tc == 0

    kernel = _make_conv_kernel(cin, lead, wp, lout, count, eps, pool)

    in_specs = [
        pl.BlockSpec((cin, ltot), lambda i: (0, 0)),    # input slab (resident)
        pl.BlockSpec((tc, k), lambda i: (i, 0)),        # [Cout, 9*Cin] weights
        pl.BlockSpec((tc, 1), lambda i: (i, 0)),        # gamma
        pl.BlockSpec((tc, 1), lambda i: (i, 0)),        # beta
        pl.BlockSpec((1, lout), lambda i: (0, 0)),      # validity mask (bf16)
    ]
    o_spec = pl.BlockSpec((tc, ltot), lambda i: (i, 0))
    o_shape = jax.ShapeDtypeStruct((cout, ltot), out_dtype)
    if pool:
        out_specs = (o_spec, pl.BlockSpec((tc, lout), lambda i: (i, 0)))
        out_shape = (o_shape, jax.ShapeDtypeStruct((cout, lout), jnp.float32))
    else:
        out_specs, out_shape = o_spec, o_shape

    o_bytes = jnp.dtype(out_dtype).itemsize
    q_bytes = cout * lout * 4 if pool else 0
    cost = pl.CostEstimate(
        flops=2 * cout * k * lout,
        transcendentals=cout,
        bytes_accessed=int(x_slab.size * 2 + w2d.size * 2 + mask.size * 2
                           + 2 * cout * 4 + cout * ltot * o_bytes + q_bytes))

    # Derive the VMEM limit from the tile sizes instead of a fixed constant;
    # clamp so it never exceeds v7x's 64 MiB physical VMEM.
    vmem_need = (x_slab.size * 2                 # resident input slab
                 + k * lout * 2                  # patches scratch
                 + 2 * tc * k * 2                # double-buffered weight tiles
                 + 2 * tc * ltot * o_bytes       # double-buffered output slab
                 + (2 * tc * lout * 4 if pool else 0)
                 + 6 * tc * lout * 4)            # f32 acc / epilogue temps
    vmem_limit = max(16 << 20, min(2 * int(vmem_need) + (4 << 20), 48 << 20))

    return pl.pallas_call(
        kernel,
        out_shape=out_shape,
        grid=(cout // tc,),
        in_specs=in_specs,
        out_specs=out_specs,
        scratch_shapes=[pltpu.VMEM((k, lout), jnp.bfloat16)],
        compiler_params=pltpu.CompilerParams(
            # TODO(synk): "parallel" + per-core patches rebuild for v7x 2 TCs.
            dimension_semantics=("arbitrary",),
            vmem_limit_bytes=int(vmem_limit)),
        cost_estimate=cost,
    )(x_slab, w2d, gamma.reshape(cout, 1), beta.reshape(cout, 1), mask)


# ------------------------------ forward pass --------------------------------
def downsample_block_forward(params, x_nchw):
    """Pallas forward of Downsample_block.  Returns (maxpooled_x, y)."""
    n, cin, h, w = x_nchw.shape
    cout = params["w1"].shape[0]
    assert h % 2 == 0 and w % 2 == 0
    hp, wp = h + 2, w + 2
    lfull = hp * wp
    pad0 = wp + 1
    lead = _round_up(pad0, 128)                  # 128-aligned zero margin
    lout = _round_up(n * lfull, 128)             # lane-dense output width
    ltot = lead + lout + lead
    count = n * h * w

    # Validity mask over the Lout output columns (shared by both convs).
    # TODO(synk): generate per-tile in-kernel from iota once L is tiled.
    m_idx = jnp.arange(lout, dtype=jnp.int32)
    r = m_idx % lfull
    hp_i = r // wp
    wp_i = r % wp
    valid = ((m_idx < n * lfull)
             & (hp_i >= 1) & (hp_i <= h)
             & (wp_i >= 1) & (wp_i <= w))
    mask = valid.astype(jnp.bfloat16).reshape(1, lout)

    # Conv1 input slab: channels-major, zero-padded, flattened -> [Cin, Ltot].
    xc = jnp.transpose(x_nchw, (1, 0, 2, 3))                    # [Cin,N,H,W]
    xp = jnp.pad(xc, ((0, 0), (0, 0), (1, 1), (1, 1)))          # [Cin,N,Hp,Wp]
    xf = xp.reshape(cin, n * lfull)
    x1 = jnp.pad(xf, ((0, 0), (lead, ltot - lead - n * lfull)))
    x1 = x1.astype(jnp.bfloat16)

    # Weights: torch OIHW [Cout,Cin,3,3] -> [Cout, 9*Cin] bf16, column order
    # t*Cin + c with t = kh*3 + kw, matching the patches-matrix row order.
    # Conv biases (params["b*_conv"]) are NOT passed: they cancel exactly
    # under the training-mode batch-norm that immediately follows each conv.
    w1 = jnp.transpose(params["w1"], (0, 2, 3, 1)).reshape(cout, 9 * cin)
    w2 = jnp.transpose(params["w2"], (0, 2, 3, 1)).reshape(cout, 9 * cout)
    w1 = w1.astype(jnp.bfloat16)
    w2 = w2.astype(jnp.bfloat16)

    # conv1 -> BN1 -> ReLU (fused): bf16 [Cout, Ltot] slab feeds conv2 as-is
    # (no recentering pad between the two convs).
    s1 = conv3x3_bn_relu(x1, w1, params["g1"], params["b1"], mask,
                         lead=lead, wp=wp, lout=lout, count=count,
                         out_dtype=jnp.bfloat16, pool=False)

    # conv2 -> BN2 -> ReLU -> fused 2x2 pool window maxima (q).
    s2, q = conv3x3_bn_relu(s1, w2, params["g2"], params["b2"], mask,
                            lead=lead, wp=wp, lout=lout, count=count,
                            out_dtype=jnp.float32, pool=True)

    # y: crop the interior of the slab and go back to NCHW.
    y_chw = (s2[:, lead:lead + n * lfull]
             .reshape(cout, n, hp, wp)[:, :, 1:h + 1, 1:w + 1])
    y = jnp.transpose(y_chw, (1, 0, 2, 3))                      # [N,Cout,H,W]

    # Pooled output: stride-2 interior columns of the window-max slab.
    q_chw = (q[:, :n * lfull]
             .reshape(cout, n, hp, wp)[:, :, 1:h + 1:2, 1:w + 1:2])
    x_down = jnp.transpose(q_chw, (1, 0, 2, 3))                 # [N,Cout,H/2,W/2]
    return x_down, y


# ------------------------- pure-JAX reference (check) -----------------------
def reference_forward(params, x_nchw):
    """XLA reference with the same precision policy (bf16 operands, f32 math)."""
    def conv_bn_relu(x, wt, bconv, g, beta):
        y = jax.lax.conv_general_dilated(
            x.astype(jnp.bfloat16), wt.astype(jnp.bfloat16),
            window_strides=(1, 1), padding=((1, 1), (1, 1)),
            dimension_numbers=("NCHW", "OIHW", "NCHW"),
            preferred_element_type=jnp.float32)
        y = y + bconv.reshape(1, -1, 1, 1)          # bias kept: must cancel in BN
        mean = jnp.mean(y, axis=(0, 2, 3), keepdims=True)
        var = jnp.mean(jnp.square(y - mean), axis=(0, 2, 3), keepdims=True)
        yn = ((y - mean) * jax.lax.rsqrt(var + 1e-5)
              * g.reshape(1, -1, 1, 1) + beta.reshape(1, -1, 1, 1))
        return jnp.maximum(yn, 0.0)

    h1 = conv_bn_relu(x_nchw, params["w1"], params["b1_conv"],
                      params["g1"], params["b1"])
    y = conv_bn_relu(h1, params["w2"], params["b2_conv"],
                     params["g2"], params["b2"])
    x_down = jax.lax.reduce_window(y, -jnp.inf, jax.lax.max,
                                   (1, 1, 2, 2), (1, 1, 2, 2), "VALID")
    return x_down, y


# ----------------------------------- main ------------------------------------
if __name__ == "__main__":
    n, c_in, h, w = 2, 4, 16, 16
    c_out = 16

    key = jax.random.PRNGKey(0)
    kx, kw1, kb1, kw2, kb2 = jax.random.split(key, 5)
    x = jax.random.normal(kx, (n, c_in, h, w), jnp.float32)

    fan1, fan2 = c_in * 9, c_out * 9
    params = {
        "w1": jax.random.uniform(kw1, (c_out, c_in, 3, 3), jnp.float32,
                                 -1.0, 1.0) / jnp.sqrt(fan1),
        "b1_conv": jax.random.uniform(kb1, (c_out,), jnp.float32,
                                      -1.0, 1.0) / jnp.sqrt(fan1),
        "w2": jax.random.uniform(kw2, (c_out, c_out, 3, 3), jnp.float32,
                                 -1.0, 1.0) / jnp.sqrt(fan2),
        "b2_conv": jax.random.uniform(kb2, (c_out,), jnp.float32,
                                      -1.0, 1.0) / jnp.sqrt(fan2),
        "g1": jnp.ones((c_out,), jnp.float32),
        "b1": jnp.zeros((c_out,), jnp.float32),
        "g2": jnp.ones((c_out,), jnp.float32),
        "b2": jnp.zeros((c_out,), jnp.float32),
    }

    fwd = jax.jit(downsample_block_forward)
    x_down, y = fwd(params, x)
    x_down, y = jax.block_until_ready((x_down, y))

    assert x_down.shape == (n, c_out, h // 2, w // 2), x_down.shape
    assert y.shape == (n, c_out, h, w), y.shape
    assert bool(jnp.all(jnp.isfinite(x_down))) and bool(jnp.all(jnp.isfinite(y)))

    x_ref, y_ref = jax.jit(reference_forward)(params, x)
    err_y = float(jnp.max(jnp.abs(y - y_ref)))
    err_x = float(jnp.max(jnp.abs(x_down - x_ref)))
    assert err_y < 5e-2 and err_x < 5e-2, (err_y, err_x)

    print("KERNEL_OK")
</pallas_src>

<mosaic_0001>
module attributes {stable_mosaic.version = 11 : i64} {
  func.func @kernel(%arg0: i32, %arg1: memref<4x1024xbf16, #tpu.memory_space<vmem>>, %arg2: memref<16x36xbf16, #tpu.memory_space<vmem>>, %arg3: memref<16x1xf32, #tpu.memory_space<vmem>>, %arg4: memref<16x1xf32, #tpu.memory_space<vmem>>, %arg5: memref<1x768xbf16, #tpu.memory_space<vmem>>, %arg6: memref<16x1024xbf16, #tpu.memory_space<vmem>>, %arg7: memref<36x768xbf16, #tpu.memory_space<vmem>>) attributes {dimension_semantics = [#tpu.dimension_semantics<arbitrary>], iteration_bounds = array<i64: 1>, scalar_prefetch = 0 : i64, scratch_operands = 1 : i64, tpu.core_type = #tpu.core_type<tc>, window_params = [{pipeline_mode = #tpu.pipeline_mode<synchronous>, transform_indices = @transform_0, window_bounds = array<i64: 4, 1024>}, {transform_indices = @transform_1, window_bounds = array<i64: 16, 36>}, {transform_indices = @transform_2, window_bounds = array<i64: 16, 1>}, {transform_indices = @transform_3, window_bounds = array<i64: 16, 1>}, {pipeline_mode = #tpu.pipeline_mode<synchronous>, transform_indices = @transform_4, window_bounds = array<i64: 1, 768>}, {transform_indices = @transform_5, window_bounds = array<i64: 16, 1024>}]} {
    %c0_i32 = arith.constant 0 : i32
    %0 = arith.cmpi eq, %arg0, %c0_i32 : i32
    %1 = arith.extui %0 : i1 to i32
    %c0_i32_0 = arith.constant 0 : i32
    %2 = arith.cmpi ne, %1, %c0_i32_0 : i32
    scf.if %2 {
      %c0_22 = arith.constant 0 : index
      %c109 = arith.constant 109 : index
      %43 = vector.load %arg1[%c0_22, %c109] : memref<4x1024xbf16, #tpu.memory_space<vmem>>, vector<4x768xbf16>
      %c0_23 = arith.constant 0 : index
      %c0_24 = arith.constant 0 : index
      %44 = vector.load %arg7[%c0_23, %c0_24] : memref<36x768xbf16, #tpu.memory_space<vmem>>, vector<4x768xbf16>
      tpu.vector_store %arg7[%c0_23, %c0_24], %43 {strides = array<i32>} : memref<36x768xbf16, #tpu.memory_space<vmem>>, vector<4x768xbf16>,
      %c0_25 = arith.constant 0 : index
      %c110 = arith.constant 110 : index
      %45 = vector.load %arg1[%c0_25, %c110] : memref<4x1024xbf16, #tpu.memory_space<vmem>>, vector<4x768xbf16>
      %c4 = arith.constant 4 : index
      %c0_26 = arith.constant 0 : index
      %46 = vector.load %arg7[%c4, %c0_26] : memref<36x768xbf16, #tpu.memory_space<vmem>>, vector<4x768xbf16>
      tpu.vector_store %arg7[%c4, %c0_26], %45 {strides = array<i32>} : memref<36x768xbf16, #tpu.memory_space<vmem>>, vector<4x768xbf16>,
      %c0_27 = arith.constant 0 : index
      %c111 = arith.constant 111 : index
      %47 = vector.load %arg1[%c0_27, %c111] : memref<4x1024xbf16, #tpu.memory_space<vmem>>, vector<4x768xbf16>
      %c8 = arith.constant 8 : index
      %c0_28 = arith.constant 0 : index
      %48 = vector.load %arg7[%c8, %c0_28] : memref<36x768xbf16, #tpu.memory_space<vmem>>, vector<4x768xbf16>
      tpu.vector_store %arg7[%c8, %c0_28], %47 {strides = array<i32>} : memref<36x768xbf16, #tpu.memory_space<vmem>>, vector<4x768xbf16>,
      %c0_29 = arith.constant 0 : index
      %c127 = arith.constant 127 : index
      %49 = vector.load %arg1[%c0_29, %c127] : memref<4x1024xbf16, #tpu.memory_space<vmem>>, vector<4x768xbf16>
      %c12 = arith.constant 12 : index
      %c0_30 = arith.constant 0 : index
      %50 = vector.load %arg7[%c12, %c0_30] : memref<36x768xbf16, #tpu.memory_space<vmem>>, vector<4x768xbf16>
      tpu.vector_store %arg7[%c12, %c0_30], %49 {strides = array<i32>} : memref<36x768xbf16, #tpu.memory_space<vmem>>, vector<4x768xbf16>,
      %c0_31 = arith.constant 0 : index
      %c128_32 = arith.constant 128 : index
      %51 = vector.load %arg1[%c0_31, %c128_32] : memref<4x1024xbf16, #tpu.memory_space<vmem>>, vector<4x768xbf16>
      %c16 = arith.constant 16 : index
      %c0_33 = arith.constant 0 : index
      %52 = vector.load %arg7[%c16, %c0_33] : memref<36x768xbf16, #tpu.memory_space<vmem>>, vector<4x768xbf16>
      tpu.vector_store %arg7[%c16, %c0_33], %51 {strides = array<i32>} : memref<36x768xbf16, #tpu.memory_space<vmem>>, vector<4x768xbf16>,
      %c0_34 = arith.constant 0 : index
      %c129 = arith.constant 129 : index
      %53 = vector.load %arg1[%c0_34, %c129] : memref<4x1024xbf16, #tpu.memory_space<vmem>>, vector<4x768xbf16>
      %c20 = arith.constant 20 : index
      %c0_35 = arith.constant 0 : index
      %54 = vector.load %arg7[%c20, %c0_35] : memref<36x768xbf16, #tpu.memory_space<vmem>>, vector<4x768xbf16>
      tpu.vector_store %arg7[%c20, %c0_35], %53 {strides = array<i32>} : memref<36x768xbf16, #tpu.memory_space<vmem>>, vector<4x768xbf16>,
      %c0_36 = arith.constant 0 : index
      %c145 = arith.constant 145 : index
      %55 = vector.load %arg1[%c0_36, %c145] : memref<4x1024xbf16, #tpu.memory_space<vmem>>, vector<4x768xbf16>
      %c24 = arith.constant 24 : index
      %c0_37 = arith.constant 0 : index
      %56 = vector.load %arg7[%c24, %c0_37] : memref<36x768xbf16, #tpu.memory_space<vmem>>, vector<4x768xbf16>
      tpu.vector_store %arg7[%c24, %c0_37], %55 {strides = array<i32>} : memref<36x768xbf16, #tpu.memory_space<vmem>>, vector<4x768xbf16>,
      %c0_38 = arith.constant 0 : index
      %c146 = arith.constant 146 : index
      %57 = vector.load %arg1[%c0_38, %c146] : memref<4x1024xbf16, #tpu.memory_space<vmem>>, vector<4x768xbf16>
      %c28 = arith.constant 28 : index
      %c0_39 = arith.constant 0 : index
      %58 = vector.load %arg7[%c28, %c0_39] : memref<36x768xbf16, #tpu.memory_space<vmem>>, vector<4x768xbf16>
      tpu.vector_store %arg7[%c28, %c0_39], %57 {strides = array<i32>} : memref<36x768xbf16, #tpu.memory_space<vmem>>, vector<4x768xbf16>,
      %c0_40 = arith.constant 0 : index
      %c147 = arith.constant 147 : index
      %59 = vector.load %arg1[%c0_40, %c147] : memref<4x1024xbf16, #tpu.memory_space<vmem>>, vector<4x768xbf16>
      %c32 = arith.constant 32 : index
      %c0_41 = arith.constant 0 : index
      %60 = vector.load %arg7[%c32, %c0_41] : memref<36x768xbf16, #tpu.memory_space<vmem>>, vector<4x768xbf16>
      tpu.vector_store %arg7[%c32, %c0_41], %59 {strides = array<i32>} : memref<36x768xbf16, #tpu.memory_space<vmem>>, vector<4x768xbf16>,
    } else {
    }
    %c0 = arith.constant 0 : index
    %c0_1 = arith.constant 0 : index
    %3 = vector.load %arg2[%c0, %c0_1] : memref<16x36xbf16, #tpu.memory_space<vmem>>, vector<16x36xbf16>
    %c0_2 = arith.constant 0 : index
    %c0_3 = arith.constant 0 : index
    %4 = vector.load %arg7[%c0_2, %c0_3] : memref<36x768xbf16, #tpu.memory_space<vmem>>, vector<36x768xbf16>
    %cst = arith.constant dense<0.000000e+00> : vector<16x768xf32>
    %5 = tpu.matmul %3, %4, %cst {dimension_numbers = #tpu.dot_dimension_numbers<[1], [0], [0], [1], [0, 0, 1, 1], [], []>} : vector<16x36xbf16>, vector<36x768xbf16>, vector<16x768xf32> -> vector<16x768xf32>
    %c0_4 = arith.constant 0 : index
    %c0_5 = arith.constant 0 : index
    %6 = vector.load %arg5[%c0_4, %c0_5] : memref<1x768xbf16, #tpu.memory_space<vmem>>, vector<1x768xbf16>
    %7 = arith.extf %6 : vector<1x768xbf16> to vector<1x768xf32>
    %8 = vector.broadcast %7 : vector<1x768xf32> to vector<16x768xf32>
    %9 = arith.mulf %5, %8 : vector<16x768xf32>
    %cst_6 = arith.constant dense<0.000000e+00> : vector<16xf32>
    %10 = vector.multi_reduction <add>, %9, %cst_6 [1] : vector<16x768xf32> to vector<16xf32>
    %11 = vector.shape_cast %10 : vector<16xf32> to vector<16x1xf32>
    %12 = arith.mulf %9, %5 : vector<16x768xf32>
    %cst_7 = arith.constant dense<0.000000e+00> : vector<16xf32>
    %13 = vector.multi_reduction <add>, %12, %cst_7 [1] : vector<16x768xf32> to vector<16xf32>
    %14 = vector.shape_cast %13 : vector<16xf32> to vector<16x1xf32>
    %cst_8 = arith.constant 0.001953125 : f32
    %15 = vector.broadcast %cst_8 : f32 to vector<16x1xf32>
    %16 = arith.mulf %11, %15 : vector<16x1xf32>
    %cst_9 = arith.constant 0.001953125 : f32
    %17 = vector.broadcast %cst_9 : f32 to vector<16x1xf32>
    %18 = arith.mulf %14, %17 : vector<16x1xf32>
    %19 = arith.mulf %16, %16 : vector<16x1xf32>
    %20 = arith.subf %18, %19 : vector<16x1xf32>
    %c0_10 = arith.constant 0 : index
    %c0_11 = arith.constant 0 : index
    %21 = vector.load %arg3[%c0_10, %c0_11] : memref<16x1xf32, #tpu.memory_space<vmem>>, vector<16x1xf32>
    %cst_12 = arith.constant 9.99999974E-6 : f32
    %22 = vector.broadcast %cst_12 : f32 to vector<16x1xf32>
    %23 = arith.addf %20, %22 : vector<16x1xf32>
    %24 = math.rsqrt %23 : vector<16x1xf32>
    %25 = arith.mulf %21, %24 : vector<16x1xf32>
    %26 = vector.broadcast %16 : vector<16x1xf32> to vector<16x768xf32>
    %27 = arith.subf %5, %26 : vector<16x768xf32>
    %28 = vector.broadcast %25 : vector<16x1xf32> to vector<16x768xf32>
    %29 = arith.mulf %27, %28 : vector<16x768xf32>
    %c0_13 = arith.constant 0 : index
    %c0_14 = arith.constant 0 : index
    %30 = vector.load %arg4[%c0_13, %c0_14] : memref<16x1xf32, #tpu.memory_space<vmem>>, vector<16x1xf32>
    %31 = vector.broadcast %30 : vector<16x1xf32> to vector<16x768xf32>
    %32 = arith.addf %29, %31 : vector<16x768xf32>
    %cst_15 = arith.constant 0.000000e+00 : f32
    %33 = vector.broadcast %cst_15 : f32 to vector<16x768xf32>
    %34 = arith.maximumf %32, %33 : vector<16x768xf32>
    %cst_16 = arith.constant 0.000000e+00 : bf16
    %35 = vector.broadcast %cst_16 : bf16 to vector<16x128xbf16>
    %c0_17 = arith.constant 0 : index
    %c0_18 = arith.constant 0 : index
    %36 = vector.load %arg6[%c0_17, %c0_18] : memref<16x1024xbf16, #tpu.memory_space<vmem>>, vector<16x128xbf16>
    tpu.vector_store %arg6[%c0_17, %c0_18], %35 {strides = array<i32>} : memref<16x1024xbf16, #tpu.memory_space<vmem>>, vector<16x128xbf16>,
    %cst_19 = arith.constant 0.000000e+00 : bf16
    %37 = vector.broadcast %cst_19 : bf16 to vector<16x128xbf16>
    %c0_20 = arith.constant 0 : index
    %c896 = arith.constant 896 : index
    %38 = vector.load %arg6[%c0_20, %c896] : memref<16x1024xbf16, #tpu.memory_space<vmem>>, vector<16x128xbf16>
    tpu.vector_store %arg6[%c0_20, %c896], %37 {strides = array<i32>} : memref<16x1024xbf16, #tpu.memory_space<vmem>>, vector<16x128xbf16>,
    %39 = vector.broadcast %7 : vector<1x768xf32> to vector<16x768xf32>
    %40 = arith.mulf %34, %39 : vector<16x768xf32>
    %41 = arith.truncf %40 : vector<16x768xf32> to vector<16x768xbf16>
    %c0_21 = arith.constant 0 : index
    %c128 = arith.constant 128 : index
    %42 = vector.load %arg6[%c0_21, %c128] : memref<16x1024xbf16, #tpu.memory_space<vmem>>, vector<16x768xbf16>
    tpu.vector_store %arg6[%c0_21, %c128], %41 {strides = array<i32>} : memref<16x1024xbf16, #tpu.memory_space<vmem>>, vector<16x768xbf16>,
    return
  }
  func.func @transform_0(%arg0: i32) -> (i32, i32) {
    %c0_i32 = arith.constant 0 : i32
    %c0_i32_0 = arith.constant 0 : i32
    %c0_i32_1 = arith.constant 0 : i32
    return %c0_i32, %c0_i32_0 : i32, i32
  }
  func.func @transform_1(%arg0: i32) -> (i32, i32) {
    %c0_i32 = arith.constant 0 : i32
    %c0_i32_0 = arith.constant 0 : i32
    return %arg0, %c0_i32 : i32, i32
  }
  func.func @transform_2(%arg0: i32) -> (i32, i32) {
    %c0_i32 = arith.constant 0 : i32
    %c0_i32_0 = arith.constant 0 : i32
    return %arg0, %c0_i32 : i32, i32
  }
  func.func @transform_3(%arg0: i32) -> (i32, i32) {
    %c0_i32 = arith.constant 0 : i32
    %c0_i32_0 = arith.constant 0 : i32
    return %arg0, %c0_i32 : i32, i32
  }
  func.func @transform_4(%arg0: i32) -> (i32, i32) {
    %c0_i32 = arith.constant 0 : i32
    %c0_i32_0 = arith.constant 0 : i32
    %c0_i32_1 = arith.constant 0 : i32
    return %c0_i32, %c0_i32_0 : i32, i32
  }
  func.func @transform_5(%arg0: i32) -> (i32, i32) {
    %c0_i32 = arith.constant 0 : i32
    %c0_i32_0 = arith.constant 0 : i32
    return %arg0, %c0_i32 : i32, i32
  }
}

module attributes {stable_mosaic.version = 11 : i64} {
  func.func @kernel(%arg0: i32, %arg1: memref<16x1024xbf16, #tpu.memory_space<vmem>>, %arg2: memref<16x144xbf16, #tpu.memory_space<vmem>>, %arg3: memref<16x1xf32, #tpu.memory_space<vmem>>, %arg4: memref<16x1xf32, #tpu.memory_space<vmem>>, %arg5: memref<1x768xbf16, #tpu.memory_space<vmem>>, %arg6: memref<16x1024xf32, #tpu.memory_space<vmem>>, %arg7: memref<16x768xf32, #tpu.memory_space<vmem>>, %arg8: memref<144x768xbf16, #tpu.memory_space<vmem>>) attributes {dimension_semantics = [#tpu.dimension_semantics<arbitrary>], iteration_bounds = array<i64: 1>, scalar_prefetch = 0 : i64, scratch_operands = 1 : i64, tpu.core_type = #tpu.core_type<tc>, window_params = [{pipeline_mode = #tpu.pipeline_mode<synchronous>, transform_indices = @transform_0, window_bounds = array<i64: 16, 1024>}, {transform_indices = @transform_1, window_bounds = array<i64: 16, 144>}, {transform_indices = @transform_2, window_bounds = array<i64: 16, 1>}, {transform_indices = @transform_3, window_bounds = array<i64: 16, 1>}, {pipeline_mode = #tpu.pipeline_mode<synchronous>, transform_indices = @transform_4, window_bounds = array<i64: 1, 768>}, {transform_indices = @transform_5, window_bounds = array<i64: 16, 1024>}, {transform_indices = @transform_6, window_bounds = array<i64: 16, 768>}]} {
    %c0_i32 = arith.constant 0 : i32
    %0 = arith.cmpi eq, %arg0, %c0_i32 : i32
    %1 = arith.extui %0 : i1 to i32
    %c0_i32_0 = arith.constant 0 : i32
    %2 = arith.cmpi ne, %1, %c0_i32_0 : i32
    scf.if %2 {
      %c0_29 = arith.constant 0 : index
      %c109 = arith.constant 109 : index
      %48 = vector.load %arg1[%c0_29, %c109] : memref<16x1024xbf16, #tpu.memory_space<vmem>>, vector<16x768xbf16>
      %c0_30 = arith.constant 0 : index
      %c0_31 = arith.constant 0 : index
      %49 = vector.load %arg8[%c0_30, %c0_31] : memref<144x768xbf16, #tpu.memory_space<vmem>>, vector<16x768xbf16>
      tpu.vector_store %arg8[%c0_30, %c0_31], %48 {strides = array<i32>} : memref<144x768xbf16, #tpu.memory_space<vmem>>, vector<16x768xbf16>,
      %c0_32 = arith.constant 0 : index
      %c110 = arith.constant 110 : index
      %50 = vector.load %arg1[%c0_32, %c110] : memref<16x1024xbf16, #tpu.memory_space<vmem>>, vector<16x768xbf16>
      %c16 = arith.constant 16 : index
      %c0_33 = arith.constant 0 : index
      %51 = vector.load %arg8[%c16, %c0_33] : memref<144x768xbf16, #tpu.memory_space<vmem>>, vector<16x768xbf16>
      tpu.vector_store %arg8[%c16, %c0_33], %50 {strides = array<i32>} : memref<144x768xbf16, #tpu.memory_space<vmem>>, vector<16x768xbf16>,
      %c0_34 = arith.constant 0 : index
      %c111 = arith.constant 111 : index
      %52 = vector.load %arg1[%c0_34, %c111] : memref<16x1024xbf16, #tpu.memory_space<vmem>>, vector<16x768xbf16>
      %c32 = arith.constant 32 : index
      %c0_35 = arith.constant 0 : index
      %53 = vector.load %arg8[%c32, %c0_35] : memref<144x768xbf16, #tpu.memory_space<vmem>>, vector<16x768xbf16>
      tpu.vector_store %arg8[%c32, %c0_35], %52 {strides = array<i32>} : memref<144x768xbf16, #tpu.memory_space<vmem>>, vector<16x768xbf16>,
      %c0_36 = arith.constant 0 : index
      %c127 = arith.constant 127 : index
      %54 = vector.load %arg1[%c0_36, %c127] : memref<16x1024xbf16, #tpu.memory_space<vmem>>, vector<16x768xbf16>
      %c48 = arith.constant 48 : index
      %c0_37 = arith.constant 0 : index
      %55 = vector.load %arg8[%c48, %c0_37] : memref<144x768xbf16, #tpu.memory_space<vmem>>, vector<16x768xbf16>
      tpu.vector_store %arg8[%c48, %c0_37], %54 {strides = array<i32>} : memref<144x768xbf16, #tpu.memory_space<vmem>>, vector<16x768xbf16>,
      %c0_38 = arith.constant 0 : index
      %c128_39 = arith.constant 128 : index
      %56 = vector.load %arg1[%c0_38, %c128_39] : memref<16x1024xbf16, #tpu.memory_space<vmem>>, vector<16x768xbf16>
      %c64 = arith.constant 64 : index
      %c0_40 = arith.constant 0 : index
      %57 = vector.load %arg8[%c64, %c0_40] : memref<144x768xbf16, #tpu.memory_space<vmem>>, vector<16x768xbf16>
      tpu.vector_store %arg8[%c64, %c0_40], %56 {strides = array<i32>} : memref<144x768xbf16, #tpu.memory_space<vmem>>, vector<16x768xbf16>,
      %c0_41 = arith.constant 0 : index
      %c129_42 = arith.constant 129 : index
      %58 = vector.load %arg1[%c0_41, %c129_42] : memref<16x1024xbf16, #tpu.memory_space<vmem>>, vector<16x768xbf16>
      %c80 = arith.constant 80 : index
      %c0_43 = arith.constant 0 : index
      %59 = vector.load %arg8[%c80, %c0_43] : memref<144x768xbf16, #tpu.memory_space<vmem>>, vector<16x768xbf16>
      tpu.vector_store %arg8[%c80, %c0_43], %58 {strides = array<i32>} : memref<144x768xbf16, #tpu.memory_space<vmem>>, vector<16x768xbf16>,
      %c0_44 = arith.constant 0 : index
      %c145 = arith.constant 145 : index
      %60 = vector.load %arg1[%c0_44, %c145] : memref<16x1024xbf16, #tpu.memory_space<vmem>>, vector<16x768xbf16>
      %c96 = arith.constant 96 : index
      %c0_45 = arith.constant 0 : index
      %61 = vector.load %arg8[%c96, %c0_45] : memref<144x768xbf16, #tpu.memory_space<vmem>>, vector<16x768xbf16>
      tpu.vector_store %arg8[%c96, %c0_45], %60 {strides = array<i32>} : memref<144x768xbf16, #tpu.memory_space<vmem>>, vector<16x768xbf16>,
      %c0_46 = arith.constant 0 : index
      %c146_47 = arith.constant 146 : index
      %62 = vector.load %arg1[%c0_46, %c146_47] : memref<16x1024xbf16, #tpu.memory_space<vmem>>, vector<16x768xbf16>
      %c112 = arith.constant 112 : index
      %c0_48 = arith.constant 0 : index
      %63 = vector.load %arg8[%c112, %c0_48] : memref<144x768xbf16, #tpu.memory_space<vmem>>, vector<16x768xbf16>
      tpu.vector_store %arg8[%c112, %c0_48], %62 {strides = array<i32>} : memref<144x768xbf16, #tpu.memory_space<vmem>>, vector<16x768xbf16>,
      %c0_49 = arith.constant 0 : index
      %c147_50 = arith.constant 147 : index
      %64 = vector.load %arg1[%c0_49, %c147_50] : memref<16x1024xbf16, #tpu.memory_space<vmem>>, vector<16x768xbf16>
      %c128_51 = arith.constant 128 : index
      %c0_52 = arith.constant 0 : index
      %65 = vector.load %arg8[%c128_51, %c0_52] : memref<144x768xbf16, #tpu.memory_space<vmem>>, vector<16x768xbf16>
      tpu.vector_store %arg8[%c128_51, %c0_52], %64 {strides = array<i32>} : memref<144x768xbf16, #tpu.memory_space<vmem>>, vector<16x768xbf16>,
    } else {
    }
    %c0 = arith.constant 0 : index
    %c0_1 = arith.constant 0 : index
    %3 = vector.load %arg2[%c0, %c0_1] : memref<16x144xbf16, #tpu.memory_space<vmem>>, vector<16x144xbf16>
    %c0_2 = arith.constant 0 : index
    %c0_3 = arith.constant 0 : index
    %4 = vector.load %arg8[%c0_2, %c0_3] : memref<144x768xbf16, #tpu.memory_space<vmem>>, vector<144x768xbf16>
    %cst = arith.constant dense<0.000000e+00> : vector<16x768xf32>
    %5 = tpu.matmul %3, %4, %cst {dimension_numbers = #tpu.dot_dimension_numbers<[1], [0], [0], [1], [0, 0, 1, 1], [], []>} : vector<16x144xbf16>, vector<144x768xbf16>, vector<16x768xf32> -> vector<16x768xf32>
    %c0_4 = arith.constant 0 : index
    %c0_5 = arith.constant 0 : index
    %6 = vector.load %arg5[%c0_4, %c0_5] : memref<1x768xbf16, #tpu.memory_space<vmem>>, vector<1x768xbf16>
    %7 = arith.extf %6 : vector<1x768xbf16> to vector<1x768xf32>
    %8 = vector.broadcast %7 : vector<1x768xf32> to vector<16x768xf32>
    %9 = arith.mulf %5, %8 : vector<16x768xf32>
    %cst_6 = arith.constant dense<0.000000e+00> : vector<16xf32>
    %10 = vector.multi_reduction <add>, %9, %cst_6 [1] : vector<16x768xf32> to vector<16xf32>
    %11 = vector.shape_cast %10 : vector<16xf32> to vector<16x1xf32>
    %12 = arith.mulf %9, %5 : vector<16x768xf32>
    %cst_7 = arith.constant dense<0.000000e+00> : vector<16xf32>
    %13 = vector.multi_reduction <add>, %12, %cst_7 [1] : vector<16x768xf32> to vector<16xf32>
    %14 = vector.shape_cast %13 : vector<16xf32> to vector<16x1xf32>
    %cst_8 = arith.constant 0.001953125 : f32
    %15 = vector.broadcast %cst_8 : f32 to vector<16x1xf32>
    %16 = arith.mulf %11, %15 : vector<16x1xf32>
    %cst_9 = arith.constant 0.001953125 : f32
    %17 = vector.broadcast %cst_9 : f32 to vector<16x1xf32>
    %18 = arith.mulf %14, %17 : vector<16x1xf32>
    %19 = arith.mulf %16, %16 : vector<16x1xf32>
    %20 = arith.subf %18, %19 : vector<16x1xf32>
    %c0_10 = arith.constant 0 : index
    %c0_11 = arith.constant 0 : index
    %21 = vector.load %arg3[%c0_10, %c0_11] : memref<16x1xf32, #tpu.memory_space<vmem>>, vector<16x1xf32>
    %cst_12 = arith.constant 9.99999974E-6 : f32
    %22 = vector.broadcast %cst_12 : f32 to vector<16x1xf32>
    %23 = arith.addf %20, %22 : vector<16x1xf32>
    %24 = math.rsqrt %23 : vector<16x1xf32>
    %25 = arith.mulf %21, %24 : vector<16x1xf32>
    %26 = vector.broadcast %16 : vector<16x1xf32> to vector<16x768xf32>
    %27 = arith.subf %5, %26 : vector<16x768xf32>
    %28 = vector.broadcast %25 : vector<16x1xf32> to vector<16x768xf32>
    %29 = arith.mulf %27, %28 : vector<16x768xf32>
    %c0_13 = arith.constant 0 : index
    %c0_14 = arith.constant 0 : index
    %30 = vector.load %arg4[%c0_13, %c0_14] : memref<16x1xf32, #tpu.memory_space<vmem>>, vector<16x1xf32>
    %31 = vector.broadcast %30 : vector<16x1xf32> to vector<16x768xf32>
    %32 = arith.addf %29, %31 : vector<16x768xf32>
    %cst_15 = arith.constant 0.000000e+00 : f32
    %33 = vector.broadcast %cst_15 : f32 to vector<16x768xf32>
    %34 = arith.maximumf %32, %33 : vector<16x768xf32>
    %cst_16 = arith.constant 0.000000e+00 : f32
    %35 = vector.broadcast %cst_16 : f32 to vector<16x128xf32>
    %c0_17 = arith.constant 0 : index
    %c0_18 = arith.constant 0 : index
    %36 = vector.load %arg6[%c0_17, %c0_18] : memref<16x1024xf32, #tpu.memory_space<vmem>>, vector<16x128xf32>
    tpu.vector_store %arg6[%c0_17, %c0_18], %35 {strides = array<i32>} : memref<16x1024xf32, #tpu.memory_space<vmem>>, vector<16x128xf32>,
    %cst_19 = arith.constant 0.000000e+00 : f32
    %37 = vector.broadcast %cst_19 : f32 to vector<16x128xf32>
    %c0_20 = arith.constant 0 : index
    %c896 = arith.constant 896 : index
    %38 = vector.load %arg6[%c0_20, %c896] : memref<16x1024xf32, #tpu.memory_space<vmem>>, vector<16x128xf32>
    tpu.vector_store %arg6[%c0_20, %c896], %37 {strides = array<i32>} : memref<16x1024xf32, #tpu.memory_space<vmem>>, vector<16x128xf32>,
    %c0_21 = arith.constant 0 : index
    %c128 = arith.constant 128 : index
    %39 = vector.load %arg6[%c0_21, %c128] : memref<16x1024xf32, #tpu.memory_space<vmem>>, vector<16x768xf32>
    tpu.vector_store %arg6[%c0_21, %c128], %34 {strides = array<i32>} : memref<16x1024xf32, #tpu.memory_space<vmem>>, vector<16x768xf32>,
    %c0_22 = arith.constant 0 : index
    %c128_23 = arith.constant 128 : index
    %40 = vector.load %arg6[%c0_22, %c128_23] : memref<16x1024xf32, #tpu.memory_space<vmem>>, vector<16x768xf32>
    %c0_24 = arith.constant 0 : index
    %c129 = arith.constant 129 : index
    %41 = vector.load %arg6[%c0_24, %c129] : memref<16x1024xf32, #tpu.memory_space<vmem>>, vector<16x768xf32>
    %c0_25 = arith.constant 0 : index
    %c146 = arith.constant 146 : index
    %42 = vector.load %arg6[%c0_25, %c146] : memref<16x1024xf32, #tpu.memory_space<vmem>>, vector<16x768xf32>
    %c0_26 = arith.constant 0 : index
    %c147 = arith.constant 147 : index
    %43 = vector.load %arg6[%c0_26, %c147] : memref<16x1024xf32, #tpu.memory_space<vmem>>, vector<16x768xf32>
    %44 = arith.maximumf %40, %41 : vector<16x768xf32>
    %45 = arith.maximumf %42, %43 : vector<16x768xf32>
    %46 = arith.maximumf %44, %45 : vector<16x768xf32>
    %c0_27 = arith.constant 0 : index
    %c0_28 = arith.constant 0 : index
    %47 = vector.load %arg7[%c0_27, %c0_28] : memref<16x768xf32, #tpu.memory_space<vmem>>, vector<16x768xf32>
    tpu.vector_store %arg7[%c0_27, %c0_28], %46 {strides = array<i32>} : memref<16x768xf32, #tpu.memory_space<vmem>>, vector<16x768xf32>,
    return
  }
  func.func @transform_0(%arg0: i32) -> (i32, i32) {
    %c0_i32 = arith.constant 0 : i32
    %c0_i32_0 = arith.constant 0 : i32
    %c0_i32_1 = arith.constant 0 : i32
    return %c0_i32, %c0_i32_0 : i32, i32
  }
  func.func @transform_1(%arg0: i32) -> (i32, i32) {
    %c0_i32 = arith.constant 0 : i32
    %c0_i32_0 = arith.constant 0 : i32
    return %arg0, %c0_i32 : i32, i32
  }
  func.func @transform_2(%arg0: i32) -> (i32, i32) {
    %c0_i32 = arith.constant 0 : i32
    %c0_i32_0 = arith.constant 0 : i32
    return %arg0, %c0_i32 : i32, i32
  }
  func.func @transform_3(%arg0: i32) -> (i32, i32) {
    %c0_i32 = arith.constant 0 : i32
    %c0_i32_0 = arith.constant 0 : i32
    return %arg0, %c0_i32 : i32, i32
  }
  func.func @transform_4(%arg0: i32) -> (i32, i32) {
    %c0_i32 = arith.constant 0 : i32
    %c0_i32_0 = arith.constant 0 : i32
    %c0_i32_1 = arith.constant 0 : i32
    return %c0_i32, %c0_i32_0 : i32, i32
  }
  func.func @transform_5(%arg0: i32) -> (i32, i32) {
    %c0_i32 = arith.constant 0 : i32
    %c0_i32_0 = arith.constant 0 : i32
    return %arg0, %c0_i32 : i32, i32
  }
  func.func @transform_6(%arg0: i32) -> (i32, i32) {
    %c0_i32 = arith.constant 0 : i32
    %c0_i32_0 = arith.constant 0 : i32
    return %arg0, %c0_i32 : i32, i32
  }
}

</mosaic_0001>

<bundles_post_ra>
// kernel: downsample_block_forward.2
= control target key start
LH: loop header
LB: loop body
LE: loop exit
PB: predicated region body
PF: predicated region fallthrough
CT: control target
= control target key end

     0   :  { %s868_s24 = smov 19   ;;  %s869_s27 = smov 18   ;;  %vm52_vm0 = vcmask 1043456   ;;  %vm54_vm1 = vcmask 154624   ;;  %vm95_vm2 = vcmask 146432   ;;  %vm135_vm3 = vcmask 138240   ;;  %s1257_s0 = inlined_call_operand.vmem [shape: bf16[4,1024], index: 0, kind: input, shape index: {}]   ;;  %s1258_s1 = inlined_call_operand.vmem [shape: bf16[16,36], index: 1, kind: input, shape index: {}]   ;;  %s1259_s4 = inlined_call_operand.vmem [shape: bf16[1,768], index: 4, kind: input, shape index: {}]   ;;  %s1260_s3 = inlined_call_operand.vmem [shape: f32[16,1], index: 3, kind: input, shape index: {}]   ;;  %s1261_s5 = inlined_call_operand.vmem [shape: bf16[16,1024], index: 5, kind: output, shape index: {}]   ;;  %s1262_s2 = inlined_call_operand.vmem [shape: f32[16,1], index: 2, kind: input, shape index: {}]  }
   0x1   :  { %v25_v0 = vld [vmem:[%s1257_s0] sm:$0xff]  ;;  %v26_v1 = vld [vmem:[%s1257_s0 + $0x8] sm:$0x3f]  ;;  %s870_s30 = smov 17   ;;  %s871_s10 = smov 1   ;;  %vm176_vm4 = vcmask 7168  }
   0x2   :  { %28 = vst [vmem:[#allocation1] ss:$2 sm:$0xff] %v25_v0  ;;  %v67_v2 = vld [vmem:[%s1257_s0 + $0x8] sm:$0x3f]  ;;  %s872_s15 = smov 127   ;;  %s873_s18 = smov 111  }
   0x3   :  { %31 = vst [vmem:[#allocation1 + $0x10] ss:$2 sm:$0xff] %v26_v1  ;;  %v108_v7 = vld [vmem:[%s1257_s0 + $0x8] sm:$0x3f]  ;;  %s874_s21 = smov 110   ;;  %s875_s22 = smov 109  }
   0x4   :  { %v148_v12 = vld [vmem:[%s1257_s0 + $0x8] sm:$0x3f]  ;;  %vm233_vm5 = vcmask 1039360   ;;  %vm273_vm6 = vcmask 908288   ;;  %vm314_vm7 = vcmask 900096   ;;  %vm354_vm8 = vcmask 891904  }
   0x5   :  { %v188_v17 = vld [vmem:[%s1257_s0 + $0x2] sm:$0xff]  ;;  %v189_v18 = vld [vmem:[%s1257_s0 + $0xa] sm:$0xf]  ;;  %vm467_vm9 = vcmask 1041408   ;;  %vm463_vm10 = vcmask 293888  }
   0x6   :  { %v205_v25 = vld [vmem:[%s1257_s0 + $0xa] sm:$0x3f] }
   0x7   :  { %v246_v27 = vld [vmem:[%s1257_s0 + $0xa] sm:$0x3f] }
   0x8   :  { %v286_v32 = vld [vmem:[%s1257_s0 + $0xa] sm:$0x3f] }
   0x9   :  { %v34_v3 = vld.sshfl [vmem:[#allocation1 + $0x8] sm:$0xff pattern:$0x75643120]  ;;  %v32_v4 = vld.sshfl [vmem:[#allocation1] sm:$0xff pattern:$0x75643120] }
   0xa   :  { %42 = vrot.lane.b32.xlu1 %v34_v3, %s868_s24  ;;  %40 = vrot.lane.b32.xlu0 %v32_v4, %s868_s24  ;;  %70 = vst [vmem:[#allocation1 + $0x1] ss:$2 sm:$0xff] %v25_v0  ;;  %v918_v5 = vld.sshfl [vmem:[#allocation1 + $0x10] sm:$0xff pattern:$0x75643120] }
   0xb   :  { %v920_v6 = vld.sshfl [vmem:[#allocation1 + $0x18] sm:$0xff pattern:$0x75643120]  ;;  %v327_v37 = vld [vmem:[%s1257_s0 + $0xa] sm:$0x3f] }
   0xc   :  { %73 = vst [vmem:[#allocation1 + $0x11] ss:$2 sm:$0xff] %v67_v2 }
  0x11   :  { %v76_v8 = vld.sshfl [vmem:[#allocation1 + $0x8] sm:$0xff pattern:$0x75643120]  ;;  %v74_v9 = vld.sshfl [vmem:[#allocation1] sm:$0xff pattern:$0x75643120] }
  0x12   :  { %84 = vrot.lane.b32.xlu0 %v76_v8, %s869_s27  ;;  %110 = vst [vmem:[#allocation1] ss:$2 sm:$0xff] %v25_v0  ;;  %82 = vrot.lane.b32.xlu2 %v74_v9, %s869_s27 }
  0x13   :  { %v927_v10 = vld.sshfl [vmem:[#allocation1 + $0x10] sm:$0xff pattern:$0x75643120]  ;;  %v929_v11 = vld.sshfl [vmem:[#allocation1 + $0x18] sm:$0xff pattern:$0x75643120] }
  0x14   :  { %113 = vst [vmem:[#allocation1 + $0x10] ss:$2 sm:$0xff] %v108_v7 }
  0x19   :  { %v114_v13 = vld.sshfl [vmem:[#allocation1] sm:$0xff pattern:$0x75643120]  ;;  %v116_v14 = vld.sshfl [vmem:[#allocation1 + $0x8] sm:$0xff pattern:$0x75643120] }
  0x1a   :  { %122 = vrot.lane.b32.xlu1 %v114_v13, %s870_s30  ;;  %151 = vst [vmem:[#allocation1 + $0x1] ss:$2 sm:$0xff] %v25_v0  ;;  %124 = vrot.lane.b32.xlu2 %v116_v14, %s870_s30 }
  0x1b   :  { %v118_v15 = vld.sshfl [vmem:[#allocation1 + $0x10] sm:$0xff pattern:$0x75643120]  ;;  %v936_v16 = vld.sshfl [vmem:[#allocation1 + $0x18] sm:$0xff pattern:$0x75643120] }
  0x1c   :  { %154 = vst [vmem:[#allocation1 + $0x11] ss:$2 sm:$0xff] %v148_v12 }
  0x21   :  { %v157_v19 = vld.sshfl [vmem:[#allocation1 + $0x8] sm:$0xff pattern:$0x75643120]  ;;  %v155_v20 = vld.sshfl [vmem:[#allocation1] sm:$0xff pattern:$0x75643120] }
  0x22   :  { %165 = vrot.lane.b32.xlu1 %v157_v19, %s871_s10  ;;  %163 = vrot.lane.b32.xlu0 %v155_v20, %s871_s10  ;;  %191 = vst [vmem:[#allocation1] ss:$2 sm:$0xff] %v188_v17 }
  0x23   :  { %v159_v21 = vld.sshfl [vmem:[#allocation1 + $0x10] sm:$0xff pattern:$0x75643120]  ;;  %v161_v22 = vld.sshfl [vmem:[#allocation1 + $0x18] sm:$0xff pattern:$0x75643120] }
  0x24   :  { %194 = vst [vmem:[#allocation1 + $0x10] ss:$2 sm:$0xff] %v189_v18 }
  0x29   :  { %v195_v23 = vld.sshfl [vmem:[#allocation1] sm:$0xff pattern:$0x75643120]  ;;  %v196_v24 = vld.sshfl [vmem:[#allocation1 + $0x8] sm:$0xff pattern:$0x75643120] }
  0x2a   :  { %201 = vst [vmem:[#allocation2 + $0x30] sm:$0x33] %v195_v23 }
  0x2b   :  { %202 = vst [vmem:[#allocation2 + $0x38] sm:$0x33] %v196_v24  ;;  %v197_v26 = vld.sshfl [vmem:[#allocation1 + $0x10] sm:$0xff pattern:$0x75643120] }
  0x2c   :  { %208 = vst [vmem:[#allocation1 + $0x1] ss:$2 sm:$0xff] %v188_v17 }
  0x2d   :  { %211 = vst [vmem:[#allocation1 + $0x11] ss:$2 sm:$0xff] %v205_v25 }
  0x2e   :  { %203 = vst [vmem:[#allocation2 + $0x40] sm:$0x33] %v197_v26 }
  0x33   :  { %v214_v28 = vld.sshfl [vmem:[#allocation1 + $0x8] sm:$0xff pattern:$0x75643120]  ;;  %v212_v29 = vld.sshfl [vmem:[#allocation1] sm:$0xff pattern:$0x75643120] }
  0x34   :  { %222 = vrot.lane.b32.xlu2 %v214_v28, %s872_s15  ;;  %220 = vrot.lane.b32.xlu1 %v212_v29, %s872_s15  ;;  %v216_v30 = vld.sshfl [vmem:[#allocation1 + $0x10] sm:$0xff pattern:$0x75643120]  ;;  %v218_v31 = vld.sshfl [vmem:[#allocation1 + $0x18] sm:$0xff pattern:$0x75643120] }
  0x35   :  { %248 = vst [vmem:[#allocation1] ss:$2 sm:$0xff] %v188_v17 }
  0x36   :  { %251 = vst [vmem:[#allocation1 + $0x10] ss:$2 sm:$0xff] %v246_v27 }
  0x3c   :  { %224 = vrot.lane.b32.xlu2 %v216_v30, %s872_s15  ;;  %v254_v33 = vld.sshfl [vmem:[#allocation1 + $0x8] sm:$0xff pattern:$0x75643120]  ;;  %v252_v34 = vld.sshfl [vmem:[#allocation1] sm:$0xff pattern:$0x75643120] }
  0x3d   :  { %262 = vrot.lane.b32.xlu0 %v254_v33, %s873_s18  ;;  %v256_v35 = vld.sshfl [vmem:[#allocation1 + $0x10] sm:$0xff pattern:$0x75643120]  ;;  %v258_v36 = vld.sshfl [vmem:[#allocation1 + $0x18] sm:$0xff pattern:$0x75643120] }
  0x3e   :  { %289 = vst [vmem:[#allocation1 + $0x1] ss:$2 sm:$0xff] %v188_v17 }
  0x3f   :  { %292 = vst [vmem:[#allocation1 + $0x11] ss:$2 sm:$0xff] %v286_v32 }
  0x44   :  { %260 = vrot.lane.b32.xlu2 %v252_v34, %s873_s18 }
  0x45   :  { %264 = vrot.lane.b32.xlu0 %v256_v35, %s873_s18  ;;  %v293_v38 = vld.sshfl [vmem:[#allocation1] sm:$0xff pattern:$0x75643120]  ;;  %v295_v39 = vld.sshfl [vmem:[#allocation1 + $0x8] sm:$0xff pattern:$0x75643120] }
  0x46   :  { %301 = vrot.lane.b32.xlu1 %v293_v38, %s874_s21  ;;  %v299_v40 = vld.sshfl [vmem:[#allocation1 + $0x18] sm:$0xff pattern:$0x75643120]  ;;  %v297_v41 = vld.sshfl [vmem:[#allocation1 + $0x10] sm:$0xff pattern:$0x75643120] }
  0x47   :  { %329 = vst [vmem:[#allocation1] ss:$2 sm:$0xff] %v188_v17 }
  0x48   :  { %332 = vst [vmem:[#allocation1 + $0x10] ss:$2 sm:$0xff] %v327_v37 }
  0x4c   :  { %303 = vrot.lane.b32.xlu2 %v295_v39, %s874_s21 }
  0x4e   :  { %305 = vrot.lane.b32.xlu1 %v297_v41, %s874_s21  ;;  %v333_v42 = vld.sshfl [vmem:[#allocation1] sm:$0xff pattern:$0x75643120]  ;;  %v335_v43 = vld.sshfl [vmem:[#allocation1 + $0x8] sm:$0xff pattern:$0x75643120] }
  0x4f   :  { %341 = vrot.lane.b32.xlu0 %v333_v42, %s875_s22  ;;  %v339_v44 = vld.sshfl [vmem:[#allocation1 + $0x18] sm:$0xff pattern:$0x75643120]  ;;  %v337_v45 = vld.sshfl [vmem:[#allocation1 + $0x10] sm:$0xff pattern:$0x75643120] }
  0x54   :  { %126 = vrot.lane.b32.xlu2 %v118_v15, %s870_s30 }
  0x56   :  { %86 = vrot.lane.b32.xlu1 %v927_v10, %s869_s27 }
  0x57   :  { %343 = vrot.lane.b32.xlu0 %v335_v43, %s875_s22 }
  0x5c   :  { %347 = vrot.lane.b32.xlu2 %v339_v44, %s875_s22 }
  0x5e   :  { %345 = vrot.lane.b32.xlu1 %v337_v45, %s875_s22 }
  0x5f   :  { %44 = vrot.lane.b32.xlu0 %v918_v5, %s868_s24 }
  0x64   :  { %266 = vrot.lane.b32.xlu2 %v258_v36, %s873_s18 }
  0x66   :  { %226 = vrot.lane.b32.xlu1 %v218_v31, %s872_s15 }
  0x67   :  { %167 = vrot.lane.b32.xlu0 %v159_v21, %s871_s10 }
  0x6c   :  { %88 = vrot.lane.b32.xlu2 %v929_v11, %s869_s27  ;;  %v83_v46 = vpop.permute.xlu2 %82 }
  0x6d   :  { %v90_v53 = vrot.slane %v83_v46, 4 }
  0x6e   :  { %46 = vrot.lane.b32.xlu1 %v920_v6, %s868_s24 }
  0x6f   :  { %307 = vrot.lane.b32.xlu0 %v299_v40, %s874_s21 }
  0x74   :  { %v125_v54 = vpop.permute.xlu2 %124 }
  0x75   :  { %v131_v59 = vrot.slane %v125_v54, 4 }
  0x76   :  { %169 = vrot.lane.b32.xlu1 %v161_v22, %s871_s10 }
  0x77   :  { %128 = vrot.lane.b32.xlu0 %v936_v16, %s870_s30 }
  0x7c   :  { %v979_v47 = vpop.permute.xlu1 %42  ;;  %v41_v48 = vpop.permute.xlu0 %40 }
  0x7d   :  { %v49_v49 = vrot.slane %v979_v47, 4  ;;  %v48_v50 = vrot.slane %v41_v48, 4 }
  0x7f   :  { %v53_v51 = vsel %vm52_vm0, %v48_v50, %v49_v49 }
  0x80   :  { %v55_v52 = vsel %vm54_vm1, %v41_v48, %v53_v51 }
  0x81   :  { %63 = vst [vmem:[#allocation2] sm:$0x33] %v55_v52 }
  0x84   :  { %v986_v55 = vpop.permute.xlu0 %84 }
  0x85   :  { %v91_v56 = vrot.slane %v986_v55, 4 }
  0x87   :  { %v94_v57 = vsel %vm52_vm0, %v90_v53, %v91_v56 }
  0x88   :  { %v96_v58 = vsel %vm95_vm2, %v83_v46, %v94_v57 }
  0x89   :  { %104 = vst [vmem:[#allocation2] sm:$0xcc] %v96_v58 }
  0x8c   :  { %v123_v60 = vpop.permute.xlu1 %122 }
  0x8d   :  { %v130_v61 = vrot.slane %v123_v60, 4 }
  0x8e   :  { %v223_v62 = vpop.permute.xlu2 %222 }
  0x8f   :  { %v134_v63 = vsel %vm52_vm0, %v130_v61, %v131_v59  ;;  %v229_v3 = vrot.slane %v223_v62, 4 }
  0x90   :  { %v136_v0 = vsel %vm135_vm3, %v123_v60, %v134_v63 }
  0x91   :  { %144 = vst [vmem:[#allocation2 + $0x18] sm:$0x33] %v136_v0 }
  0x94   :  { %v995_v1 = vpop.permute.xlu1 %165  ;;  %v164_v2 = vpop.permute.xlu0 %163 }
  0x95   :  { %v172_v4 = vrot.slane %v995_v1, 4  ;;  %v171_v5 = vrot.slane %v164_v2, 4 }
  0x96   :  { %v998_v6 = vpop.permute.xlu2 %224 }
  0x97   :  { %v175_v7 = vsel %vm52_vm0, %v171_v5, %v172_v4  ;;  %v230_v8 = vrot.slane %v998_v6, 4 }
  0x98   :  { %v177_v9 = vsel %vm176_vm4, %v164_v2, %v175_v7 }
  0x99   :  { %185 = vst [vmem:[#allocation2 + $0x18] sm:$0xcc] %v177_v9  ;;  %v235_v10 = vsel %vm52_vm0, %v229_v3, %v230_v8 }
  0x9a   :  { %v236_v11 = vsel %vm233_vm5, %v223_v62, %v235_v10 }
  0x9b   :  { %243 = vst [vmem:[#allocation2 + $0x38] sm:$0xcc] %v236_v11 }
  0x9e   :  { %v261_v12 = vpop.permute.xlu2 %260 }
  0x9f   :  { %v268_v18 = vrot.slane %v261_v12, 4 }
  0xa6   :  { %v304_v13 = vpop.permute.xlu2 %303  ;;  %v221_v14 = vpop.permute.xlu1 %220 }
  0xa7   :  { %v228_v15 = vrot.slane %v221_v14, 4  ;;  %v310_v28 = vrot.slane %v304_v13, 4 }
  0xa9   :  { %v232_v16 = vsel %vm52_vm0, %v228_v15, %v229_v3 }
  0xaa   :  { %v234_v17 = vsel %vm233_vm5, %v221_v14, %v232_v16 }
  0xab   :  { %242 = vst [vmem:[#allocation2 + $0x30] sm:$0xcc] %v234_v17 }
  0xae   :  { %v1011_v19 = vpop.permute.xlu2 %126 }
  0xaf   :  { %v263_v20 = vpop.permute.xlu0 %262  ;;  %v132_v21 = vrot.slane %v1011_v19, 4 }
  0xb0   :  { %v269_v22 = vrot.slane %v263_v20, 4 }
  0xb1   :  { %v137_v23 = vsel %vm52_vm0, %v131_v59, %v132_v21 }
  0xb2   :  { %v272_v24 = vsel %vm52_vm0, %v268_v18, %v269_v22  ;;  %v138_v25 = vsel %vm135_vm3, %v125_v54, %v137_v23 }
  0xb3   :  { %v274_v26 = vsel %vm273_vm6, %v261_v12, %v272_v24  ;;  %145 = vst [vmem:[#allocation2 + $0x20] sm:$0x33] %v138_v25 }
  0xb4   :  { %282 = vst [vmem:[#allocation2 + $0x48] sm:$0x33] %v274_v26 }
  0xb6   :  { %v348_v27 = vpop.permute.xlu2 %347 }
  0xb7   :  { %v265_v29 = vpop.permute.xlu0 %264  ;;  %v352_v63 = vrot.slane %v348_v27, 4 }
  0xb8   :  { %v270_v30 = vrot.slane %v265_v29, 4  ;;  %v302_v31 = vpop.permute.xlu1 %301 }
  0xb9   :  { %v309_v32 = vrot.slane %v302_v31, 4 }
  0xba   :  { %v275_v33 = vsel %vm52_vm0, %v269_v22, %v270_v30 }
  0xbb   :  { %v276_v34 = vsel %vm273_vm6, %v263_v20, %v275_v33  ;;  %v313_v35 = vsel %vm52_vm0, %v309_v32, %v310_v28 }
  0xbc   :  { %283 = vst [vmem:[#allocation2 + $0x50] sm:$0x33] %v276_v34  ;;  %v315_v36 = vsel %vm314_vm7, %v302_v31, %v313_v35  ;;  %v843_v35 = vld [vmem:[#allocation2 + $0x14] sm:$0xf0] }
  0xbd   :  { %323 = vst [vmem:[#allocation2 + $0x48] sm:$0xcc] %v315_v36 }
  0xbe   :  { %v267_v37 = vpop.permute.xlu2 %266 }
  0xbf   :  { %v271_v38 = vrot.slane %v267_v37, 4 }
  0xc0   :  { %v1024_v39 = vpop.permute.xlu1 %305 }
  0xc1   :  { %v277_v40 = vsel %vm52_vm0, %v270_v30, %v271_v38  ;;  %v311_v41 = vrot.slane %v1024_v39, 4  ;;  %v342_v42 = vpop.permute.xlu0 %341  ;;  %v846_v30 = vld [vmem:[#allocation2 + $0x34] sm:$0xf]  ;;  %v789_v38 = vld [vmem:[#allocation2 + $0x18] sm:$0xf0] }
  0xc2   :  { %v278_v43 = vsel %vm273_vm6, %v265_v29, %v277_v40  ;;  %v349_v53 = vrot.slane %v342_v42, 4 }
  0xc3   :  { %284 = vst [vmem:[#allocation2 + $0x58] sm:$0x33] %v278_v43  ;;  %v316_v44 = vsel %vm52_vm0, %v310_v28, %v311_v41  ;;  %v811_v28 = vld [vmem:[#allocation2 + $0x30] sm:$0xf]  ;;  %v787_v43 = vld [vmem:[#allocation2] sm:$0xf] }
  0xc4   :  { %v317_v45 = vsel %vm314_vm7, %v304_v13, %v316_v44  ;;  %v849_v24 = vld [vmem:[#allocation2 + $0x44] sm:$0xf0]  ;;  %v813_v25 = vld [vmem:[#allocation2 + $0x48] sm:$0xf0]  ;;  %v840_v44 = vld [vmem:[#allocation2 + $0x4] sm:$0xf] }
  0xc5   :  { %324 = vst [vmem:[#allocation2 + $0x50] sm:$0xcc] %v317_v45  ;;  %v816_v34 = vor.u32 %v846_v30, %v813_v25 }
  0xc6   :  { %v89_v46 = vpop.permute.xlu2 %88 }
  0xc7   :  { %v93_v48 = vrot.slane %v89_v46, 4 }
  0xc8   :  { %v87_v50 = vpop.permute.xlu1 %86 }
  0xc9   :  { %v92_v51 = vrot.slane %v87_v50, 4  ;;  %v344_v52 = vpop.permute.xlu0 %343 }
  0xca   :  { %v350_v54 = vrot.slane %v344_v52, 4 }
  0xcb   :  { %v97_v57 = vsel %vm52_vm0, %v91_v56, %v92_v51  ;;  %v99_v58 = vsel %vm52_vm0, %v92_v51, %v93_v48  ;;  %v788_v51 = vor.u32 %v843_v35, %v787_v43 }
  0xcc   :  { %v98_v59 = vsel %vm95_vm2, %v986_v55, %v97_v57  ;;  %v100_v60 = vsel %vm95_vm2, %v87_v50, %v99_v58  ;;  %v353_v61 = vsel %vm52_vm0, %v349_v53, %v350_v54  ;;  %v850_v46 = vld [vmem:[#allocation2 + $0x4c] sm:$0xf0]  ;;  %v792_v58 = vor.u32 %v840_v44, %v789_v38 }
  0xcd   :  { %105 = vst [vmem:[#allocation2 + $0x8] sm:$0xcc] %v98_v59  ;;  %v355_v62 = vsel %vm354_vm8, %v342_v42, %v353_v61  ;;  %v819_v61 = vld [vmem:[#allocation2 + $0x38] sm:$0xf] }
  0xce   :  { %106 = vst [vmem:[#allocation2 + $0x10] sm:$0xcc] %v100_v60 }
  0xcf   :  { %363 = vst [vmem:[#allocation2 + $0x60] sm:$0x33] %v355_v62 }
  0xd0   :  { %v346_v0 = vpop.permute.xlu1 %345 }
  0xd1   :  { %v351_v2 = vrot.slane %v346_v0, 4  ;;  %v1042_v3 = vpop.permute.xlu0 %44 }
  0xd2   :  { %v50_v56 = vrot.slane %v1042_v3, 4 }
  0xd3   :  { %v356_v5 = vsel %vm52_vm0, %v350_v54, %v351_v2  ;;  %v358_v55 = vsel %vm52_vm0, %v351_v2, %v352_v63  ;;  %v821_v54 = vld [vmem:[#allocation2 + $0x50] sm:$0xf0]  ;;  %v839_v63 = vld [vmem:[%s1258_s1] sm:$0xff] }
  0xd4   :  { %v357_v7 = vsel %vm354_vm8, %v344_v52, %v356_v5  ;;  %v359_v9 = vsel %vm354_vm8, %v346_v0, %v358_v55  ;;  %v56_v10 = vsel %vm52_vm0, %v49_v49, %v50_v56  ;;  %v820_v0 = vor.u32 %v850_v46, %v819_v61  ;;  %v847_v2 = vld [vmem:[#allocation2 + $0x3c] sm:$0xf] }
  0xd5   :  { %364 = vst [vmem:[#allocation2 + $0x68] sm:$0x33] %v357_v7  ;;  %v57_v11 = vsel %vm54_vm1, %v979_v47, %v56_v10  ;;  %v824_v7 = vor.u32 %v847_v2, %v821_v54 }
  0xd6   :  { %365 = vst [vmem:[#allocation2 + $0x70] sm:$0x33] %v359_v9  ;;  %v380_v12 = vld [vmem:[#allocation2 + $0x60] sm:$0x33] }
  0xd7   :  { %64 = vst [vmem:[#allocation2 + $0x8] sm:$0x33] %v57_v11  ;;  %v427_v13 = vunpack.c.l.b16 %v380_v12  ;;  %v428_v14 = vunpack.c.h.b16 %v380_v12 }
  0xd8   :  { %v227_v15 = vpop.permute.xlu1 %226 }
  0xd9   :  { %v231_v16 = vrot.slane %v227_v15, 4  ;;  %v1056_v17 = vpop.permute.xlu0 %167  ;;  %v445_v18 = vpack.c.b16 %v427_v13, %v427_v13  ;;  %v446_v20 = vpack.c.b16 %v428_v14, %v428_v14 }
  0xda   :  { %v173_v22 = vrot.slane %v1056_v17, 4 }
  0xdb   :  { %v237_v49 = vsel %vm52_vm0, %v230_v8, %v231_v16  ;;  %v469_v47 = vsel %vm467_vm9, %v445_v18, 0  ;;  %v472_v23 = vsel %vm467_vm9, %v446_v20, 0 }
  0xdc   :  { %v238_v26 = vsel %vm233_vm5, %v998_v6, %v237_v49  ;;  %v178_v27 = vsel %vm52_vm0, %v172_v4, %v173_v22  ;;  %491 = vmatpush.bf16.msra.mxu0 %v469_v47  ;;  %505 = vmatpush.bf16.msra.mxu1 %v472_v23  ;;  %v381_v29 = vld [vmem:[#allocation2 + $0x68] sm:$0x33]  ;;  %v812_v6 = vor.u32 %v849_v24, %v811_v28 }
  0xdd   :  { %244 = vst [vmem:[#allocation2 + $0x40] sm:$0xcc] %v238_v26  ;;  %v179_v8 = vsel %vm176_vm4, %v995_v1, %v178_v27  ;;  %v429_v31 = vunpack.c.l.b16 %v381_v29  ;;  %v430_v32 = vunpack.c.h.b16 %v381_v29  ;;  %v382_v33 = vld [vmem:[#allocation2 + $0x70] sm:$0x33] }
  0xde   :  { %186 = vst [vmem:[#allocation2 + $0x20] sm:$0xcc] %v179_v8  ;;  %v431_v36 = vunpack.c.l.b16 %v382_v33  ;;  %v432_v37 = vunpack.c.h.b16 %v382_v33 }
  0xdf   :  { %v447_v4 = vpack.c.b16 %v429_v31, %v429_v31  ;;  %v448_v40 = vpack.c.b16 %v430_v32, %v430_v32 }
  0xe0   :  { %492 = vmatpush.bf16.msra.mxu0 %v812_v6  ;;  %506 = vmatpush.bf16.msra.mxu1 %v816_v34  ;;  %v47_v42 = vpop.permute.xlu1 %46  ;;  %v449_v45 = vpack.c.b16 %v431_v36, %v431_v36  ;;  %v450_v1 = vpack.c.b16 %v432_v37, %v432_v37 }
  0xe1   :  { %v51_v48 = vrot.slane %v47_v42, 4  ;;  %v308_v50 = vpop.permute.xlu0 %307  ;;  %v475_v52 = vsel %vm467_vm9, %v447_v4, 0  ;;  %v478_v53 = vsel %vm467_vm9, %v448_v40, 0 }
  0xe2   :  { %v312_v57 = vrot.slane %v308_v50, 4  ;;  %519 = vmatpush.bf16.msra.mxu2 %v475_v52  ;;  %533 = vmatpush.bf16.msra.mxu3 %v478_v53  ;;  %v481_v59 = vsel %vm467_vm9, %v449_v45, 0  ;;  %v484_v60 = vsel %vm467_vm9, %v450_v1, 0 }
  0xe3   :  { %v58_v62 = vsel %vm52_vm0, %v50_v56, %v51_v48 }
  0xe4   :  { %v59_v5 = vsel %vm54_vm1, %v1042_v3, %v58_v62  ;;  %v318_v55 = vsel %vm52_vm0, %v311_v41, %v312_v57  ;;  %493 = vmatpush.bf16.msra.mxu0 %v788_v51  ;;  %507 = vmatpush.bf16.msra.mxu1 %v792_v58  ;;  %v795_v41 = vld [vmem:[#allocation2 + $0x8] sm:$0xf]  ;;  %v841_v3 = vld [vmem:[#allocation2 + $0xc] sm:$0xf]  ;;  %v827_v49 = vld [vmem:[#allocation2 + $0x40] sm:$0xf] }
  0xe5   :  { %65 = vst [vmem:[#allocation2 + $0x10] sm:$0x33] %v59_v5  ;;  %v319_v56 = vsel %vm314_vm7, %v1024_v39, %v318_v55  ;;  %v844_v9 = vld [vmem:[#allocation2 + $0x1c] sm:$0xf0]  ;;  %v797_v10 = vld [vmem:[#allocation2 + $0x20] sm:$0xf0] }
  0xe6   :  { %325 = vst [vmem:[#allocation2 + $0x58] sm:$0xcc] %v319_v56  ;;  %520 = vmatpush.bf16.msra.mxu2 %v820_v0  ;;  %534 = vmatpush.bf16.msra.mxu3 %v824_v7  ;;  %v796_v12 = vor.u32 %v844_v9, %v795_v41  ;;  %v800_v13 = vor.u32 %v841_v3, %v797_v10  ;;  %v848_v47 = vld [vmem:[#allocation2 + $0x44] sm:$0xf] }
  0xe7   :  { %833 = vmatmul.msk.bf16.vlgmr.msra.gmra.mxu0 %vm463_vm10, %v839_v63  ;;  %834 = vmatmul.msk.bf16.vlgmr.msra.gmra.mxu1 %vm463_vm10, %v839_v63 }
  0xe8   :  { %547 = vmatpush.bf16.msrb.mxu0 %v481_v59  ;;  %561 = vmatpush.bf16.msrb.mxu1 %v484_v60  ;;  %v170_v11 = vpop.permute.xlu1 %169 }
  0xe9   :  { %v174_v14 = vrot.slane %v170_v11, 4  ;;  %v129_v15 = vpop.permute.xlu0 %128 }
  0xea   :  { %v133_v16 = vrot.slane %v129_v15, 4  ;;  %521 = vmatpush.bf16.msra.mxu2 %v796_v12  ;;  %535 = vmatpush.bf16.msra.mxu3 %v800_v13 }
  0xeb   :  { %v180_v39 = vsel %vm52_vm0, %v173_v22, %v174_v14 }
  0xec   :  { %v181_v18 = vsel %vm176_vm4, %v1056_v17, %v180_v39  ;;  %v139_v20 = vsel %vm52_vm0, %v132_v21, %v133_v16  ;;  %v803_v17 = vld [vmem:[#allocation2 + $0x10] sm:$0xf]  ;;  %v842_v21 = vld [vmem:[#allocation2 + $0x14] sm:$0xf] }
  0xed   :  { %187 = vst [vmem:[#allocation2 + $0x28] sm:$0xcc] %v181_v18  ;;  %v140_v23 = vsel %vm135_vm3, %v1011_v19, %v139_v20  ;;  %835 = vmatmul.msk.bf16.vlgmr.msra.gmra.mxu2 %vm463_vm10, %v839_v63  ;;  %836 = vmatmul.msk.bf16.vlgmr.msra.gmra.mxu3 %vm463_vm10, %v839_v63  ;;  %v851_v24 = vld [vmem:[#allocation2 + $0x54] sm:$0xf0]  ;;  %v829_v25 = vld [vmem:[#allocation2 + $0x58] sm:$0xf0] }
  0xee   :  { %146 = vst [vmem:[#allocation2 + $0x28] sm:$0x33] %v140_v23  ;;  %v828_v22 = vor.u32 %v851_v24, %v827_v49  ;;  %v832_v26 = vor.u32 %v848_v47, %v829_v25  ;;  %v570_v19 = vld [vmem:[%s1259_s4] sm:$0x3f] }
  0xef   :  { %v571_v30 = vunpack.c.l.bf16 %v570_v19  ;;  %v572_v38 = vunpack.c.h.bf16 %v570_v19 }
  0xf0   :  { %548 = vmatpush.bf16.msrb.mxu0 %v828_v22  ;;  %562 = vmatpush.bf16.msrb.mxu1 %v832_v26 }
  0xf1   :  { %v575_v32 = vperm.slane %v571_v30, 0  ;;  %v576_v6 = vperm.slane %v571_v30, 2  ;;  %v577_v36 = vperm.slane %v571_v30, 4  ;;  %v578_v37 = vperm.slane %v571_v30, 6 }
  0xf2   :  { %v579_v48 = vperm.slane %v572_v38, 0  ;;  %v580_v53 = vperm.slane %v572_v38, 2 }
  0xf3   :  { %v1113_v34 = vperm.slane %v575_v32, 0  ;;  %v1115_v35 = vperm.slane %v576_v6, 0  ;;  %v1121_v42 = vperm.slane %v577_v36, 0  ;;  %v1127_v45 = vperm.slane %v578_v37, 0 }
  0xf4   :  { %v1146_v0 = vperm.slane %v580_v53, 0 }
  0xf5   :  { %v845_v27 = vld [vmem:[#allocation2 + $0x24] sm:$0xf0]  ;;  %v805_v28 = vld [vmem:[#allocation2 + $0x28] sm:$0xf0] }
  0xf6   :  { %v804_v29 = vor.u32 %v845_v27, %v803_v17  ;;  %v808_v8 = vor.u32 %v842_v21, %v805_v28 }
  0xf8   :  { %549 = vmatpush.bf16.msrb.mxu0 %v804_v29  ;;  %563 = vmatpush.bf16.msrb.mxu1 %v808_v8 }
  0xfb   :  { %837 = vmatmul.msk.bf16.vlgmr.msrb.gmra.mxu0 %vm463_vm10, %v839_v63  ;;  %838 = vmatmul.msk.bf16.vlgmr.msrb.gmra.mxu1 %vm463_vm10, %v839_v63  ;;  %v1144_v63 = vperm.slane %v579_v48, 0 }
 0x164   :  { %v1109_v31 = vpop.f32.mrf.mxu0  ;;  %v1111_v33 = vpop.f32.mrf.mxu1 }
 0x165   :  { %v593_v4 = vmul.f32 %v1113_v34, %v1109_v31  ;;  %v594_v40 = vmul.f32 %v1115_v35, %v1111_v33 }
 0x167   :  { %v619_v50 = vmul.f32 %v593_v4, %v1109_v31  ;;  %v620_v51 = vmul.f32 %v594_v40, %v1111_v33  ;;  %v605_v54 = vadd.f32 %v594_v40, %v593_v4  ;;  %v876_v4 = vmov 0   ;;  %v713_v40 = vld [vmem:[%s1260_s3] sm:$0xff] }
 0x168   :  { %863 = vset.pattern.permute.xlu1 %v876_v4  ;;  %749 = vst [vmem:[%s1261_s5] sm:$0xf] %v876_v4  ;;  %861 = vset.pattern.permute.xlu2 %v876_v4 }
 0x169   :  { %v631_v61 = vadd.f32 %v620_v51, %v619_v50  ;;  %750 = vst [vmem:[%s1261_s5 + $0x20] sm:$0xf] %v876_v4  ;;  %862 = vset.pattern.permute.xlu0 %v876_v4 }
 0x16a   :  { %751 = vst [vmem:[%s1261_s5 + $0x1c] sm:$0xf] %v876_v4 }
 0x16b   :  { %752 = vst [vmem:[%s1261_s5 + $0x3c] sm:$0xf] %v876_v4 }
 0x16c   :  { %v1123_v43 = vpop.f32.mrf.mxu0  ;;  %v1125_v44 = vpop.f32.mrf.mxu1 }
 0x16d   :  { %v599_v59 = vmul.f32 %v1113_v34, %v1123_v43  ;;  %v600_v60 = vmul.f32 %v1115_v35, %v1125_v44 }
 0x16f   :  { %v625_v55 = vmul.f32 %v599_v59, %v1123_v43  ;;  %v626_v7 = vmul.f32 %v600_v60, %v1125_v44  ;;  %v612_v14 = vadd.f32 %v600_v60, %v599_v59 }
 0x170   :  { %v1129_v1 = vpop.f32.mrf.mxu2  ;;  %v1131_v46 = vpop.f32.mrf.mxu3 }
 0x171   :  { %v595_v52 = vmul.f32 %v1121_v42, %v1129_v1  ;;  %v596_v58 = vmul.f32 %v1127_v45, %v1131_v46  ;;  %v638_v18 = vadd.f32 %v626_v7, %v625_v55 }
 0x173   :  { %v621_v57 = vmul.f32 %v595_v52, %v1129_v1  ;;  %v606_v62 = vadd.f32 %v605_v54, %v595_v52  ;;  %v622_v5 = vmul.f32 %v596_v58, %v1131_v46 }
 0x175   :  { %v632_v2 = vadd.f32 %v631_v61, %v621_v57  ;;  %v607_v12 = vadd.f32 %v606_v62, %v596_v58 }
 0x177   :  { %v633_v39 = vadd.f32 %v632_v2, %v622_v5 }
 0x178   :  { %v1151_v56 = vpop.f32.mrf.mxu0  ;;  %v1153_v9 = vpop.f32.mrf.mxu1 }
 0x179   :  { %v597_v10 = vmul.f32 %v1144_v63, %v1151_v56  ;;  %v1157_v41 = vpop.f32.mrf.mxu2  ;;  %v1159_v3 = vpop.f32.mrf.mxu3  ;;  %v598_v11 = vmul.f32 %v1146_v0, %v1153_v9 }
 0x17a   :  { %v601_v13 = vmul.f32 %v1121_v42, %v1157_v41  ;;  %v602_v49 = vmul.f32 %v1127_v45, %v1159_v3 }
 0x17b   :  { %v623_v15 = vmul.f32 %v597_v10, %v1151_v56  ;;  %v608_v16 = vadd.f32 %v607_v12, %v597_v10  ;;  %v624_v24 = vmul.f32 %v598_v11, %v1153_v9 }
 0x17c   :  { %v627_v20 = vmul.f32 %v601_v13, %v1157_v41  ;;  %v613_v47 = vadd.f32 %v612_v14, %v601_v13  ;;  %v628_v28 = vmul.f32 %v602_v49, %v1159_v3 }
 0x17d   :  { %v609_v23 = vadd.f32 %v608_v16, %v598_v11  ;;  %v634_v25 = vadd.f32 %v633_v39, %v623_v15  ;;  %v653_v15 = vld [vmem:[%s1262_s2] sm:$0xff] }
 0x17e   :  { %v639_v22 = vadd.f32 %v638_v18, %v627_v20  ;;  %v614_v21 = vadd.f32 %v613_v47, %v602_v49 }
 0x17f   :  { %610 = vadd.xlane.f32.xlu2 %v609_v23  ;;  %v635_v26 = vadd.f32 %v634_v25, %v624_v24  ;;  %v654_v23 = vld [vmem:[%s1262_s2 + $0x8] sm:$0xff] }
 0x180   :  { %v1170_v17 = vpop.f32.mrf.mxu0  ;;  %v1172_v27 = vpop.f32.mrf.mxu1  ;;  %v640_v19 = vadd.f32 %v639_v22, %v628_v28  ;;  %v714_v22 = vld [vmem:[%s1260_s3 + $0x8] sm:$0xff] }
 0x181   :  { %v603_v29 = vmul.f32 %v1144_v63, %v1170_v17  ;;  %v604_v8 = vmul.f32 %v1146_v0, %v1172_v27  ;;  %636 = vadd.xlane.f32.xlu1 %v635_v26 }
 0x183   :  { %v629_v30 = vmul.f32 %v603_v29, %v1170_v17  ;;  %v615_v32 = vadd.f32 %v614_v21, %v603_v29  ;;  %v630_v6 = vmul.f32 %v604_v8, %v1172_v27 }
 0x185   :  { %v616_v36 = vadd.f32 %v615_v32, %v604_v8  ;;  %v641_v37 = vadd.f32 %v640_v19, %v629_v30 }
 0x187   :  { %617 = vadd.xlane.f32.xlu0 %v616_v36  ;;  %v642_v38 = vadd.f32 %v641_v37, %v630_v6 }
 0x189   :  { %643 = vadd.xlane.f32.xlu2 %v642_v38 }
 0x19a   :  { %717 = vperm.xlu1 %863, %v713_v40  }
 0x1f2   :  { %v611_v48 = vpop.xlane.xlu2 %610 }
 0x1f3   :  { %v645_v50 = vmul.f32 0.001953125, %v611_v48 }
 0x1f4   :  { %v637_v51 = vpop.xlane.xlu1 %636 }
 0x1f5   :  { %v647_v52 = vmul.f32 0.001953125, %v637_v51  ;;  %v649_v53 = vmul.f32 %v645_v50, %v645_v50  ;;  %v679_v21 = vsub.f32 %v1109_v31, %v645_v50  ;;  %v680_v28 = vsub.f32 %v1111_v33, %v645_v50 }
 0x1f6   :  { %v681_v29 = vsub.f32 %v1129_v1, %v645_v50  ;;  %v682_v8 = vsub.f32 %v1131_v46, %v645_v50  ;;  %v683_v32 = vsub.f32 %v1151_v56, %v645_v50  ;;  %v684_v6 = vsub.f32 %v1153_v9, %v645_v50 }
 0x1f7   :  { %v651_v54 = vsub.f32 %v647_v52, %v649_v53 }
 0x1f9   :  { %v655_v57 = vadd.f32 1e-05, %v651_v54 }
 0x1fa   :  { %v618_v58 = vpop.xlane.xlu0 %617 }
 0x1fb   :  { %864 = vrsqrt.f32 %v655_v57  ;;  %v1196_v59 = vmul.f32 0.001953125, %v618_v58  ;;  %vm663_vm12 = vweird.f32 %v655_v57 }
 0x1fc   :  { %v644_v60 = vpop.xlane.xlu2 %643 }
 0x1fd   :  { %v648_v61 = vmul.f32 0.001953125, %v644_v60  ;;  %v650_v62 = vmul.f32 %v1196_v59, %v1196_v59 }
 0x1ff   :  { %v652_v2 = vsub.f32 %v648_v61, %v650_v62 }
 0x201   :  { %v865_v5 = vpop.eup %864  ;;  %v656_v55 = vadd.f32 1e-05, %v652_v2 }
 0x202   :  { %v658_v7 = vmul.f32 %v865_v5, %v655_v57  ;;  %vm664_vm11 = vweird.f32 %v865_v5 }
 0x203   :  { %866 = vrsqrt.f32 %v656_v55  ;;  %vm665_vm13 = vmor %vm663_vm12, %vm664_vm11  ;;  %vm673_vm15 = vweird.f32 %v656_v55 }
 0x204   :  { %v659_v10 = vmul.f32 %v865_v5, %v658_v7 }
 0x206   :  { %v660_v11 = vmul.f32 0.5, %v659_v10 }
 0x208   :  { %v661_v12 = vsub.f32 1.5, %v660_v11  ;;  %v685_v11 = vsub.f32 %v1123_v43, %v1196_v59 }
 0x209   :  { %v867_v13 = vpop.eup %866 }
 0x20a   :  { %v668_v14 = vmul.f32 %v867_v13, %v656_v55  ;;  %v662_v16 = vmul.f32 %v865_v5, %v661_v12  ;;  %vm674_vm14 = vweird.f32 %v867_v13  ;;  %v686_v12 = vsub.f32 %v1125_v44, %v1196_v59 }
 0x20b   :  { %vm675_vm0 = vmor %vm673_vm15, %vm674_vm14 }
 0x20c   :  { %v669_v39 = vmul.f32 %v867_v13, %v668_v14  ;;  %v666_v18 = vsel %vm665_vm13, %v865_v5, %v662_v16  ;;  %v718_v30 = vpop.permute.xlu1 %717  ;;  %v688_v14 = vsub.f32 %v1159_v3, %v1196_v59  ;;  %v690_v16 = vsub.f32 %v1172_v27, %v1196_v59 }
 0x20d   :  { %v677_v20 = vmul.f32 %v666_v18, %v653_v15  ;;  %v689_v15 = vsub.f32 %v1170_v17, %v1196_v59 }
 0x20e   :  { %v670_v49 = vmul.f32 0.5, %v669_v39 }
 0x20f   :  { %693 = vperm.xlu2 %861, %v677_v20  }
 0x210   :  { %v671_v47 = vsub.f32 1.5, %v670_v49 }
 0x212   :  { %v672_v24 = vmul.f32 %v867_v13, %v671_v47 }
 0x214   :  { %v676_v25 = vsel %vm675_vm0, %v867_v13, %v672_v24  ;;  %v687_v13 = vsub.f32 %v1157_v41, %v1196_v59 }
 0x215   :  { %v678_v26 = vmul.f32 %v676_v25, %v654_v23 }
 0x217   :  { %698 = vperm.xlu0 %862, %v678_v26   ;;  %722 = vperm.xlu2 %861, %v714_v22  }
 0x269   :  { %v694_v19 = vpop.permute.xlu2 %693 }
 0x26a   :  { %v701_v36 = vmul.f32 %v694_v19, %v679_v21  ;;  %v702_v37 = vmul.f32 %v694_v19, %v680_v28  ;;  %v703_v38 = vmul.f32 %v694_v19, %v681_v29  ;;  %v704_v4 = vmul.f32 %v694_v19, %v682_v8 }
 0x26b   :  { %v705_v40 = vmul.f32 %v694_v19, %v683_v32  ;;  %v706_v48 = vmul.f32 %v694_v19, %v684_v6 }
 0x26c   :  { %v725_v51 = vadd.f32 %v718_v30, %v701_v36  ;;  %v726_v31 = vadd.f32 %v718_v30, %v702_v37  ;;  %v727_v52 = vadd.f32 %v718_v30, %v703_v38  ;;  %v728_v33 = vadd.f32 %v718_v30, %v704_v4 }
 0x26d   :  { %v729_v53 = vadd.f32 %v718_v30, %v705_v40  ;;  %v730_v1 = vadd.f32 %v718_v30, %v706_v48 }
 0x26e   :  { %v737_v54 = vmax.f32 %v725_v51, 0.0  ;;  %v738_v46 = vmax.f32 %v726_v31, 0.0  ;;  %v739_v57 = vmax.f32 %v727_v52, 0.0  ;;  %v740_v58 = vmax.f32 %v728_v33, 0.0 }
 0x26f   :  { %v741_v60 = vmax.f32 %v729_v53, 0.0  ;;  %v742_v56 = vmax.f32 %v730_v1, 0.0 }
 0x270   :  { %v753_v9 = vmul.f32 %v737_v54, %v1113_v34  ;;  %v754_v50 = vmul.f32 %v738_v46, %v1115_v35  ;;  %v755_v61 = vmul.f32 %v739_v57, %v1121_v42  ;;  %v756_v62 = vmul.f32 %v740_v58, %v1127_v45 }
 0x271   :  { %v757_v2 = vmul.f32 %v741_v60, %v1144_v63  ;;  %v758_v5 = vmul.f32 %v742_v56, %v1146_v0  ;;  %v723_v47 = vpop.permute.xlu2 %722 }
 0x272   :  { %v765_v55 = vpack.c.bf16 %v754_v50, %v753_v9  ;;  %v766_v7 = vpack.c.bf16 %v756_v62, %v755_v61 }
 0x273   :  { %v767_v10 = vpack.c.bf16 %v758_v5, %v757_v2 }
 0x274   :  { %771 = vst [vmem:[%s1261_s5 + $0x4] sm:$0xff] %v765_v55 }
 0x275   :  { %772 = vst [vmem:[%s1261_s5 + $0xc] sm:$0xff] %v766_v7 }
 0x276   :  { %773 = vst [vmem:[%s1261_s5 + $0x14] sm:$0xff] %v767_v10 }
 0x289   :  { %v699_v39 = vpop.permute.xlu0 %698 }
 0x28a   :  { %v707_v18 = vmul.f32 %v699_v39, %v685_v11  ;;  %v708_v20 = vmul.f32 %v699_v39, %v686_v12  ;;  %v709_v49 = vmul.f32 %v699_v39, %v687_v13  ;;  %v710_v43 = vmul.f32 %v699_v39, %v688_v14 }
 0x28b   :  { %v711_v23 = vmul.f32 %v699_v39, %v689_v15  ;;  %v712_v44 = vmul.f32 %v699_v39, %v690_v16 }
 0x28c   :  { %v731_v24 = vadd.f32 %v723_v47, %v707_v18  ;;  %v732_v25 = vadd.f32 %v723_v47, %v708_v20  ;;  %v733_v41 = vadd.f32 %v723_v47, %v709_v49  ;;  %v734_v22 = vadd.f32 %v723_v47, %v710_v43 }
 0x28d   :  { %v735_v26 = vadd.f32 %v723_v47, %v711_v23  ;;  %v736_v3 = vadd.f32 %v723_v47, %v712_v44 }
 0x28e   :  { %v743_v21 = vmax.f32 %v731_v24, 0.0  ;;  %v744_v28 = vmax.f32 %v732_v25, 0.0  ;;  %v745_v17 = vmax.f32 %v733_v41, 0.0  ;;  %v746_v29 = vmax.f32 %v734_v22, 0.0 }
 0x28f   :  { %v747_v8 = vmax.f32 %v735_v26, 0.0  ;;  %v748_v27 = vmax.f32 %v736_v3, 0.0 }
 0x290   :  { %v759_v59 = vmul.f32 %v743_v21, %v1113_v34  ;;  %v760_v19 = vmul.f32 %v744_v28, %v1115_v35  ;;  %v761_v30 = vmul.f32 %v745_v17, %v1121_v42  ;;  %v762_v32 = vmul.f32 %v746_v29, %v1127_v45 }
 0x291   :  { %v763_v6 = vmul.f32 %v747_v8, %v1144_v63  ;;  %v764_v36 = vmul.f32 %v748_v27, %v1146_v0 }
 0x292   :  { %v768_v37 = vpack.c.bf16 %v760_v19, %v759_v59  ;;  %v769_v38 = vpack.c.bf16 %v762_v32, %v761_v30 }
 0x293   :  { %v770_v4 = vpack.c.bf16 %v764_v36, %v763_v6 }
 0x294   :  { %774 = vst [vmem:[%s1261_s5 + $0x24] sm:$0xff] %v768_v37 }
 0x295   :  { %775 = vst [vmem:[%s1261_s5 + $0x2c] sm:$0xff] %v769_v38 }
 0x296   :  { %776 = vst [vmem:[%s1261_s5 + $0x34] sm:$0xff] %v770_v4 }

// kernel: downsample_block_forward.3
= control target key start
LH: loop header
LB: loop body
LE: loop exit
PB: predicated region body
PF: predicated region fallthrough
CT: control target
= control target key end

     0   :  { %s1795_s27 = smov 109   ;;  %s1796_s28 = smov 110   ;;  %vm67_vm0 = vcmask 1043456   ;;  %vm536_vm1 = vcmask 891904   ;;  %vm471_vm2 = vcmask 900096   ;;  %vm406_vm3 = vcmask 908288   ;;  %s2639_s0 = inlined_call_operand.vmem [shape: bf16[16,1024], index: 0, kind: input, shape index: {}]   ;;  %s2640_s1 = inlined_call_operand.vmem [shape: bf16[16,144], index: 1, kind: input, shape index: {}]   ;;  %s2641_s4 = inlined_call_operand.vmem [shape: bf16[1,768], index: 4, kind: input, shape index: {}]   ;;  %s2642_s3 = inlined_call_operand.vmem [shape: f32[16,1], index: 3, kind: input, shape index: {}]   ;;  %s2643_s2 = inlined_call_operand.vmem [shape: f32[16,1], index: 2, kind: input, shape index: {}]   ;;  %s2644_s5 = inlined_call_operand.vmem [shape: f32[16,1024], index: 5, kind: output, shape index: {0}]   ;;  %s2645_s6 = inlined_call_operand.vmem [shape: f32[16,768], index: 6, kind: output, shape index: {1}]  }
   0x1   :  { %v495_v0 = vld [vmem:[%s2639_s0 + $0x4] sm:$0xff]  ;;  %v435_v1 = vld [vmem:[%s2639_s0 + $0x2c] sm:$0xff]  ;;  %v436_v4 = vld [vmem:[%s2639_s0 + $0x34] sm:$0xff]  ;;  %s1797_s11 = smov 111   ;;  %s1798_s12 = smov 127   ;;  %vm341_vm4 = vcmask 1039360  }
   0x2   :  { %v431_v2 = vld [vmem:[%s2639_s0 + $0xc] sm:$0xff]  ;;  %511 = vrot.lane.b32.xlu2 %v495_v0, %s1795_s27  ;;  %456 = vrot.lane.b32.xlu1 %v435_v1, %s1796_s28  ;;  %298 = vst [vmem:[#allocation2 + $0xe0] sm:$0xff] %v435_v1  ;;  %v499_v3 = vld [vmem:[%s2639_s0 + $0x24] sm:$0xff]  ;;  %s1799_s15 = smov 1   ;;  %s1800_s22 = smov 17   ;;  %vm895_vm5 = vcmask 130048  }
   0x3   :  { %295 = vst [vmem:[#allocation2 + $0xc8] sm:$0xff] %v431_v2  ;;  %448 = vrot.lane.b32.xlu0 %v431_v2, %s1796_s28  ;;  %v432_v5 = vld [vmem:[%s2639_s0 + $0x14] sm:$0xff]  ;;  %v224_v6 = vld [vmem:[%s2639_s0 + $0x8] sm:$0xff]  ;;  %s1801_s23 = smov 18   ;;  %v227_v11 = vld [vmem:[%s2639_s0 + $0x20] sm:$0xff]  ;;  %s1802_s10 = smov 19  }
   0x4   :  { %294 = vst [vmem:[#allocation2 + $0xc0] sm:$0xff] %v495_v0  ;;  %v228_v7 = vld [vmem:[%s2639_s0 + $0x28] sm:$0xff]  ;;  %v229_v8 = vld [vmem:[%s2639_s0 + $0x30] sm:$0xff]  ;;  %v433_v12 = vld [vmem:[%s2639_s0 + $0x1c] sm:$0xf]  ;;  %vm264_vm6 = vcmask 7168  }
   0x5   :  { %297 = vst [vmem:[#allocation2 + $0xd8] sm:$0xff] %v499_v3  ;;  %v225_v9 = vld [vmem:[%s2639_s0 + $0x10] sm:$0xff]  ;;  %v223_v13 = vld [vmem:[%s2639_s0] sm:$0xff]  ;;  %v437_v19 = vld [vmem:[%s2639_s0 + $0x3c] sm:$0xf]  ;;  %vm199_vm7 = vcmask 138240  }
   0x6   :  { %v372_v24 = vld [vmem:[%s2639_s0 + $0x3c] sm:$0xf]  ;;  %v161_v57 = vld [vmem:[%s2639_s0 + $0x18] sm:$0xf]  ;;  %vm134_vm8 = vcmask 146432   ;;  %vm69_vm9 = vcmask 154624  }
   0x7   :  { %v368_v25 = vld [vmem:[%s2639_s0 + $0x1c] sm:$0xf]  ;;  %v230_v58 = vld [vmem:[%s2639_s0 + $0x38] sm:$0xf] }
   0x8   :  { %v303_v34 = vld [vmem:[%s2639_s0 + $0x1c] sm:$0xf]  ;;  %v226_v63 = vld [vmem:[%s2639_s0 + $0x18] sm:$0xf] }
   0x9   :  { %v307_v47 = vld [vmem:[%s2639_s0 + $0x3c] sm:$0xf] }
   0xa   :  { %513 = vrot.lane.b32.xlu2 %v431_v2, %s1795_s27  ;;  %458 = vrot.lane.b32.xlu1 %v436_v4, %s1796_s28 }
   0xb   :  { %450 = vrot.lane.b32.xlu0 %v432_v5, %s1796_s28 }
  0x12   :  { %521 = vrot.lane.b32.xlu1 %v435_v1, %s1795_s27  ;;  %383 = vrot.lane.b32.xlu2 %v431_v2, %s1797_s11 }
  0x13   :  { %519 = vrot.lane.b32.xlu0 %v499_v3, %s1795_s27 }
  0x1a   :  { %391 = vrot.lane.b32.xlu1 %v435_v1, %s1797_s11  ;;  %393 = vrot.lane.b32.xlu2 %v436_v4, %s1797_s11 }
  0x1b   :  { %385 = vrot.lane.b32.xlu0 %v432_v5, %s1797_s11 }
  0x22   :  { %326 = vrot.lane.b32.xlu2 %v435_v1, %s1798_s12  ;;  %320 = vrot.lane.b32.xlu1 %v432_v5, %s1798_s12 }
  0x23   :  { %318 = vrot.lane.b32.xlu0 %v431_v2, %s1798_s12 }
  0x2a   :  { %454 = vrot.lane.b32.xlu2 %v499_v3, %s1796_s28  ;;  %446 = vrot.lane.b32.xlu1 %v495_v0, %s1796_s28 }
  0x2b   :  { %328 = vrot.lane.b32.xlu0 %v436_v4, %s1798_s12 }
  0x32   :  { %389 = vrot.lane.b32.xlu1 %v499_v3, %s1797_s11  ;;  %241 = vrot.lane.b32.xlu2 %v224_v6, %s1799_s15 }
  0x33   :  { %381 = vrot.lane.b32.xlu0 %v495_v0, %s1797_s11 }
  0x3a   :  { %249 = vrot.lane.b32.xlu1 %v228_v7, %s1799_s15  ;;  %251 = vrot.lane.b32.xlu2 %v229_v8, %s1799_s15 }
  0x3b   :  { %243 = vrot.lane.b32.xlu0 %v225_v9, %s1799_s15 }
  0x42   :  { %324 = vrot.lane.b32.xlu1 %v499_v3, %s1798_s12  ;;  %515 = vrot.lane.b32.xlu2 %v432_v5, %s1795_s27 }
  0x43   :  { %316 = vrot.lane.b32.xlu0 %v495_v0, %s1798_s12 }
  0x4a   :  { %178 = vrot.lane.b32.xlu2 %v225_v9, %s1800_s22  ;;  %176 = vrot.lane.b32.xlu1 %v224_v6, %s1800_s22 }
  0x4b   :  { %523 = vrot.lane.b32.xlu0 %v436_v4, %s1795_s27 }
  0x52   :  { %186 = vrot.lane.b32.xlu1 %v229_v8, %s1800_s22  ;;  %111 = vrot.lane.b32.xlu2 %v224_v6, %s1801_s23 }
  0x53   :  { %184 = vrot.lane.b32.xlu0 %v228_v7, %s1800_s22 }
  0x5a   :  { %119 = vrot.lane.b32.xlu1 %v228_v7, %s1801_s23  ;;  %121 = vrot.lane.b32.xlu2 %v229_v8, %s1801_s23 }
  0x5b   :  { %113 = vrot.lane.b32.xlu0 %v225_v9, %s1801_s23 }
  0x5c   :  { %v512_v10 = vpop.permute.xlu2 %511 }
  0x5d   :  { %v527_v14 = vrot.slane %v512_v10, 4 }
  0x62   :  { %247 = vrot.lane.b32.xlu1 %v227_v11, %s1799_s15  ;;  %452 = vrot.lane.b32.xlu2 %v433_v12, %s1796_s28 }
  0x63   :  { %239 = vrot.lane.b32.xlu0 %v223_v13, %s1799_s15 }
  0x64   :  { %v1918_v15 = vpop.permute.xlu2 %513 }
  0x65   :  { %v528_v16 = vrot.slane %v1918_v15, 4 }
  0x67   :  { %v535_v17 = vsel %vm67_vm0, %v527_v14, %v528_v16  ;;  %v498_v14 = vld [vmem:[%s2639_s0 + $0x1c] sm:$0xf] }
  0x68   :  { %v537_v18 = vsel %vm536_vm1, %v512_v10, %v535_v17 }
  0x69   :  { %554 = vst [vmem:[#allocation2 + $0x180] sm:$0xff] %v537_v18  ;;  %v165_v18 = vld [vmem:[%s2639_s0 + $0x38] sm:$0xf] }
  0x6a   :  { %47 = vrot.lane.b32.xlu2 %v225_v9, %s1802_s10  ;;  %45 = vrot.lane.b32.xlu1 %v224_v6, %s1802_s10 }
  0x6b   :  { %460 = vrot.lane.b32.xlu0 %v437_v19, %s1796_s28 }
  0x6c   :  { %v1931_v20 = vpop.permute.xlu2 %383 }
  0x6d   :  { %v398_v54 = vrot.slane %v1931_v20, 4 }
  0x70   :  { %v1684_v59 = vld [vmem:[#allocation2 + $0x180] sm:$0xf]  ;;  %v1762_v60 = vld [vmem:[#allocation2 + $0x184] sm:$0xf] }
  0x72   :  { %174 = vrot.lane.b32.xlu2 %v223_v13, %s1800_s22  ;;  %55 = vrot.lane.b32.xlu1 %v229_v8, %s1802_s10 }
  0x73   :  { %53 = vrot.lane.b32.xlu0 %v228_v7, %s1802_s10 }
  0x74   :  { %v457_v21 = vpop.permute.xlu1 %456  ;;  %v1936_v22 = vpop.permute.xlu2 %393 }
  0x75   :  { %v1938_v23 = vpop.permute.xlu0 %448  ;;  %v467_v28 = vrot.slane %v457_v21, 4  ;;  %v403_v49 = vrot.slane %v1936_v22, 4 }
  0x76   :  { %v463_v31 = vrot.slane %v1938_v23, 4 }
  0x7a   :  { %395 = vrot.lane.b32.xlu2 %v372_v24, %s1797_s11  ;;  %387 = vrot.lane.b32.xlu1 %v368_v25, %s1797_s11 }
  0x7b   :  { %182 = vrot.lane.b32.xlu0 %v227_v11, %s1800_s22 }
  0x7c   :  { %v1949_v26 = vpop.permute.xlu1 %458  ;;  %v1951_v27 = vpop.permute.xlu2 %326 }
  0x7d   :  { %v468_v29 = vrot.slane %v1949_v26, 4  ;;  %v1954_v30 = vpop.permute.xlu0 %450 }
  0x7e   :  { %v464_v32 = vrot.slane %v1954_v30, 4 }
  0x7f   :  { %v479_v33 = vsel %vm67_vm0, %v467_v28, %v468_v29 }
  0x80   :  { %v480_v35 = vsel %vm471_vm2, %v457_v21, %v479_v33  ;;  %v473_v36 = vsel %vm67_vm0, %v463_v31, %v464_v32 }
  0x81   :  { %493 = vst [vmem:[#allocation2 + $0x170] sm:$0xff] %v480_v35  ;;  %v474_v37 = vsel %vm471_vm2, %v1938_v23, %v473_v36 }
  0x82   :  { %490 = vst [vmem:[#allocation2 + $0x158] sm:$0xff] %v474_v37  ;;  %322 = vrot.lane.b32.xlu2 %v303_v34, %s1798_s12  ;;  %117 = vrot.lane.b32.xlu1 %v227_v11, %s1801_s23  ;;  %v337_v37 = vrot.slane %v1951_v27, 4 }
  0x83   :  { %109 = vrot.lane.b32.xlu0 %v223_v13, %s1801_s23 }
  0x84   :  { %v1975_v38 = vpop.permute.xlu1 %521  ;;  %v455_v39 = vpop.permute.xlu2 %454 }
  0x85   :  { %v532_v40 = vrot.slane %v1975_v38, 4  ;;  %v520_v41 = vpop.permute.xlu0 %519  ;;  %v466_v42 = vrot.slane %v455_v39, 4 }
  0x86   :  { %v531_v43 = vrot.slane %v520_v41, 4 }
  0x87   :  { %v477_v44 = vsel %vm67_vm0, %v466_v42, %v467_v28 }
  0x88   :  { %v542_v45 = vsel %vm67_vm0, %v531_v43, %v532_v40  ;;  %v478_v46 = vsel %vm471_vm2, %v455_v39, %v477_v44  ;;  %v1760_v1 = vld [vmem:[#allocation2 + $0x16c] sm:$0xf0]  ;;  %v30_v43 = vld [vmem:[%s2639_s0 + $0x18] sm:$0xf] }
  0x89   :  { %v543_v48 = vsel %vm536_vm1, %v520_v41, %v542_v45  ;;  %492 = vst [vmem:[#allocation2 + $0x168] sm:$0xff] %v478_v46  ;;  %v1668_v0 = vld [vmem:[#allocation2 + $0x158] sm:$0xf] }
  0x8a   :  { %557 = vst [vmem:[#allocation2 + $0x198] sm:$0xff] %v543_v48  ;;  %51 = vrot.lane.b32.xlu2 %v227_v11, %s1802_s10  ;;  %43 = vrot.lane.b32.xlu1 %v223_v13, %s1802_s10  ;;  %v1669_v7 = vor.u32 %v1760_v1, %v1668_v0  ;;  %v502_v13 = vld [vmem:[%s2639_s0 + $0x3c] sm:$0xf]  ;;  %v100_v44 = vld [vmem:[%s2639_s0 + $0x38] sm:$0xf] }
  0x8b   :  { %330 = vrot.lane.b32.xlu0 %v307_v47, %s1798_s12 }
  0x8c   :  { %v1991_v50 = vpop.permute.xlu1 %391  ;;  %v1993_v51 = vpop.permute.xlu2 %241 }
  0x8d   :  { %v402_v52 = vrot.slane %v1991_v50, 4  ;;  %v1996_v53 = vpop.permute.xlu0 %385 }
  0x8e   :  { %v399_v55 = vrot.slane %v1996_v53, 4 }
  0x8f   :  { %v414_v56 = vsel %vm67_vm0, %v402_v52, %v403_v49 }
  0x90   :  { %v415_v61 = vsel %vm406_vm3, %v1991_v50, %v414_v56  ;;  %v408_v62 = vsel %vm67_vm0, %v398_v54, %v399_v55 }
  0x91   :  { %428 = vst [vmem:[#allocation2 + $0x140] sm:$0xff] %v415_v61  ;;  %v409_v2 = vsel %vm406_vm3, %v1931_v20, %v408_v62  ;;  %v1765_v3 = vld [vmem:[#allocation2 + $0x194] sm:$0xf0]  ;;  %v1686_v4 = vld [vmem:[#allocation2 + $0x198] sm:$0xf0] }
  0x92   :  { %425 = vst [vmem:[#allocation2 + $0x128] sm:$0xff] %v409_v2  ;;  %180 = vrot.lane.b32.xlu2 %v161_v57, %s1800_s22  ;;  %253 = vrot.lane.b32.xlu1 %v230_v58, %s1799_s15  ;;  %v1685_v5 = vor.u32 %v1765_v3, %v1684_v59  ;;  %v1689_v6 = vor.u32 %v1762_v60, %v1686_v4  ;;  %v34_v58 = vld [vmem:[%s2639_s0 + $0x38] sm:$0xf]  ;;  %v1759_v60 = vld [vmem:[#allocation2 + $0x164] sm:$0xf0] }
  0x93   :  { %245 = vrot.lane.b32.xlu0 %v226_v63, %s1799_s15  ;;  %v1662_v61 = vld [vmem:[#allocation2 + $0x168] sm:$0xf0]  ;;  %v1596_v62 = vld [vmem:[#allocation2 + $0xc8] sm:$0xf]  ;;  %v1742_v3 = vld [vmem:[#allocation2 + $0xdc] sm:$0xf0] }
  0x94   :  { %920 = vmatpush.bf16.msra.mxu1 %v1685_v5  ;;  %948 = vmatpush.bf16.msra.mxu3 %v1689_v6  ;;  %v2026_v8 = vpop.permute.xlu1 %320  ;;  %v2028_v9 = vpop.permute.xlu2 %251  ;;  %v1712_v20 = vld [vmem:[%s2640_s1 + $0x4] sm:$0xf] }
  0x95   :  { %v334_v10 = vrot.slane %v2026_v8, 4  ;;  %v2031_v11 = vpop.permute.xlu0 %318 }
  0x96   :  { %v333_v12 = vrot.slane %v2031_v11, 4 }
  0x98   :  { %955 = vmatpush.bf16.msrb.mxu1 %v1669_v7  ;;  %v343_v17 = vsel %vm67_vm0, %v333_v12, %v334_v10  ;;  %v1754_v19 = vld [vmem:[#allocation2 + $0x13c] sm:$0xf0] }
  0x99   :  { %v344_v21 = vsel %vm341_vm4, %v2031_v11, %v343_v17  ;;  %v1644_v24 = vld [vmem:[#allocation2 + $0x128] sm:$0xf] }
  0x9a   :  { %360 = vst [vmem:[#allocation2 + $0xf8] sm:$0xff] %v344_v21  ;;  %525 = vrot.lane.b32.xlu2 %v502_v13, %s1795_s27  ;;  %517 = vrot.lane.b32.xlu1 %v498_v14, %s1795_s27  ;;  %v1645_v25 = vor.u32 %v1754_v19, %v1644_v24  ;;  %v261_v13 = vrot.slane %v2028_v9, 4 }
  0x9b   :  { %188 = vrot.lane.b32.xlu0 %v165_v18, %s1800_s22  ;;  %v1597_v18 = vor.u32 %v1742_v3, %v1596_v62 }
  0x9c   :  { %956 = vmatpush.bf16.msrb.mxu1 %v1645_v25  ;;  %v447_v28 = vpop.permute.xlu1 %446  ;;  %v2053_v33 = vpop.permute.xlu2 %515  ;;  %v256_v25 = vrot.slane %v1993_v51, 4 }
  0x9d   :  { %v462_v34 = vrot.slane %v447_v28, 4  ;;  %v2055_v35 = vpop.permute.xlu0 %328  ;;  %v529_v36 = vrot.slane %v2053_v33, 4 }
  0x9e   :  { %v338_v39 = vrot.slane %v2055_v35, 4 }
  0x9f   :  { %v470_v41 = vsel %vm67_vm0, %v462_v34, %v463_v31  ;;  %v538_v42 = vsel %vm67_vm0, %v528_v16, %v529_v36  ;;  %v96_v16 = vld [vmem:[%s2639_s0 + $0x18] sm:$0xf] }
  0xa0   :  { %v472_v45 = vsel %vm471_vm2, %v447_v28, %v470_v41  ;;  %v349_v23 = vsel %vm67_vm0, %v337_v37, %v338_v39  ;;  %v539_v31 = vsel %vm536_vm1, %v1918_v15, %v538_v42 }
  0xa1   :  { %489 = vst [vmem:[#allocation2 + $0x150] sm:$0xff] %v472_v45  ;;  %v350_v46 = vsel %vm341_vm4, %v1951_v27, %v349_v23  ;;  %v1620_v50 = vld [vmem:[#allocation2 + $0xf8] sm:$0xf] }
  0xa2   :  { %363 = vst [vmem:[#allocation2 + $0x110] sm:$0xff] %v350_v46  ;;  %49 = vrot.lane.b32.xlu2 %v30_v43, %s1802_s10  ;;  %123 = vrot.lane.b32.xlu1 %v100_v44, %s1801_s23 }
  0xa3   :  { %555 = vst [vmem:[#allocation2 + $0x188] sm:$0xff] %v539_v31  ;;  %115 = vrot.lane.b32.xlu0 %v96_v16, %s1801_s23 }
  0xa4   :  { %v390_v47 = vpop.permute.xlu1 %389  ;;  %v2090_v48 = vpop.permute.xlu2 %178 }
  0xa5   :  { %v401_v15 = vrot.slane %v390_v47, 4  ;;  %v382_v56 = vpop.permute.xlu0 %381 }
  0xa6   :  { %v397_v57 = vrot.slane %v382_v56, 4 }
  0xa7   :  { %v412_v59 = vsel %vm67_vm0, %v401_v15, %v402_v52 }
  0xa8   :  { %v413_v63 = vsel %vm406_vm3, %v390_v47, %v412_v59  ;;  %v405_v0 = vsel %vm67_vm0, %v397_v57, %v398_v54  ;;  %v1660_v1 = vld [vmem:[#allocation2 + $0x150] sm:$0xf]  ;;  %v1756_v2 = vld [vmem:[#allocation2 + $0x154] sm:$0xf]  ;;  %v1486_v54 = vld [vmem:[%s2640_s1 + $0x8] sm:$0xf0] }
  0xa9   :  { %427 = vst [vmem:[#allocation2 + $0x138] sm:$0xff] %v413_v63  ;;  %v407_v4 = vsel %vm406_vm3, %v382_v56, %v405_v0  ;;  %v1661_v5 = vor.u32 %v1759_v60, %v1660_v1  ;;  %v1665_v6 = vor.u32 %v1756_v2, %v1662_v61  ;;  %v1748_v7 = vld [vmem:[#allocation2 + $0x10c] sm:$0xf0]  ;;  %v2115_v19 = vor.u32 %v1712_v20, %v1486_v54 }
  0xaa   :  { %424 = vst [vmem:[#allocation2 + $0x120] sm:$0xff] %v407_v4  ;;  %v1621_v52 = vor.u32 %v1748_v7, %v1620_v50  ;;  %v192_v2 = vrot.slane %v2090_v48, 4  ;;  %v1588_v50 = vld [vmem:[#allocation2 + $0xc0] sm:$0xf]  ;;  %v1741_v7 = vld [vmem:[#allocation2 + $0xd4] sm:$0xf0] }
  0xab   :  { %57 = vrot.lane.b32.xlu0 %v34_v58, %s1802_s10  ;;  %899 = vmatpush.bf16.msra.mxu0 %v1661_v5 }
  0xac   :  { %927 = vmatpush.bf16.msra.mxu2 %v1665_v6  ;;  %957 = vmatpush.bf16.msrb.mxu1 %v1621_v52  ;;  %v2111_v14 = vpop.permute.xlu1 %249  ;;  %v2113_v17 = vpop.permute.xlu2 %111  ;;  %v1738_v52 = vld [vmem:[#allocation2 + $0xc4] sm:$0xf] }
  0xad   :  { %v260_v21 = vrot.slane %v2111_v14, 4  ;;  %v2118_v24 = vpop.permute.xlu0 %243  ;;  %1707 = vmatmul.msk.bf16.vlgmr.msra.gmra.mxu3 %vm895_vm5, %v2115_v19  ;;  %1706 = vmatmul.msk.bf16.vlgmr.msra.gmra.mxu1 %vm895_vm5, %v2115_v19 }
  0xae   :  { %v257_v28 = vrot.slane %v2118_v24, 4 }
  0xaf   :  { %v272_v34 = vsel %vm67_vm0, %v260_v21, %v261_v13 }
  0xb0   :  { %v273_v41 = vsel %vm264_vm6, %v2111_v14, %v272_v34  ;;  %v266_v42 = vsel %vm67_vm0, %v256_v25, %v257_v28  ;;  %v1753_v43 = vld [vmem:[#allocation2 + $0x134] sm:$0xf0]  ;;  %v1638_v44 = vld [vmem:[#allocation2 + $0x138] sm:$0xf0]  ;;  %958 = vmatpush.bf16.msrb.mxu1 %v1597_v18 }
  0xb1   :  { %286 = vst [vmem:[#allocation2 + $0xb0] sm:$0xff] %v273_v41  ;;  %v267_v45 = vsel %vm264_vm6, %v1993_v51, %v266_v42  ;;  %v1636_v23 = vld [vmem:[#allocation2 + $0x120] sm:$0xf]  ;;  %v1750_v31 = vld [vmem:[#allocation2 + $0x124] sm:$0xf] }
  0xb2   :  { %283 = vst [vmem:[#allocation2 + $0x98] sm:$0xff] %v267_v45  ;;  %v1637_v16 = vor.u32 %v1753_v43, %v1636_v23  ;;  %v1641_v46 = vor.u32 %v1750_v31, %v1638_v44  ;;  %v1590_v42 = vld [vmem:[#allocation2 + $0xd8] sm:$0xf0] }
  0xb4   :  { %900 = vmatpush.bf16.msra.mxu0 %v1637_v16  ;;  %928 = vmatpush.bf16.msra.mxu2 %v1641_v46  ;;  %v325_v47 = vpop.permute.xlu1 %324  ;;  %v2140_v15 = vpop.permute.xlu2 %121  ;;  %v1593_v16 = vor.u32 %v1738_v52, %v1590_v42 }
  0xb5   :  { %v336_v56 = vrot.slane %v325_v47, 4  ;;  %v317_v57 = vpop.permute.xlu0 %316 }
  0xb6   :  { %v332_v58 = vrot.slane %v317_v57, 4 }
  0xb7   :  { %v347_v59 = vsel %vm67_vm0, %v336_v56, %v337_v37 }
  0xb8   :  { %v348_v60 = vsel %vm341_vm4, %v325_v47, %v347_v59  ;;  %v340_v61 = vsel %vm67_vm0, %v332_v58, %v333_v12  ;;  %v1736_v62 = vld [vmem:[#allocation2 + $0xac] sm:$0xf0]  ;;  %v1670_v58 = vld [vmem:[#allocation2 + $0x170] sm:$0xf0] }
  0xb9   :  { %362 = vst [vmem:[#allocation2 + $0x108] sm:$0xff] %v348_v60  ;;  %v342_v63 = vsel %vm341_vm4, %v317_v57, %v340_v61  ;;  %v1572_v0 = vld [vmem:[#allocation2 + $0x98] sm:$0xf]  ;;  %v1757_v57 = vld [vmem:[#allocation2 + $0x15c] sm:$0xf] }
  0xba   :  { %359 = vst [vmem:[#allocation2 + $0xf0] sm:$0xff] %v342_v63  ;;  %v1573_v1 = vor.u32 %v1736_v62, %v1572_v0  ;;  %v1692_v60 = vld [vmem:[#allocation2 + $0x188] sm:$0xf]  ;;  %v131_v63 = vrot.slane %v2140_v15, 4  ;;  %v1673_v0 = vor.u32 %v1757_v57, %v1670_v58 }
  0xbc   :  { %959 = vmatpush.bf16.msrb.mxu1 %v1573_v1  ;;  %v177_v3 = vpop.permute.xlu1 %176  ;;  %v453_v27 = vpop.permute.xlu2 %452 }
  0xbd   :  { %v2151_v4 = vpop.permute.xlu0 %523  ;;  %v191_v37 = vrot.slane %v177_v3, 4  ;;  %v465_v5 = vrot.slane %v453_v27, 4  ;;  %v1751_v27 = vld [vmem:[#allocation2 + $0x12c] sm:$0xf] }
  0xbe   :  { %v533_v11 = vrot.slane %v2151_v4, 4 }
  0xbf   :  { %v201_v12 = vsel %vm67_vm0, %v191_v37, %v192_v2  ;;  %v475_v6 = vsel %vm67_vm0, %v464_v32, %v465_v5  ;;  %v1646_v5 = vld [vmem:[#allocation2 + $0x140] sm:$0xf0] }
  0xc0   :  { %v544_v20 = vsel %vm67_vm0, %v532_v40, %v533_v11  ;;  %v202_v54 = vsel %vm199_vm7, %v177_v3, %v201_v12  ;;  %v476_v18 = vsel %vm471_vm2, %v1954_v30, %v475_v6  ;;  %v1747_v34 = vld [vmem:[#allocation2 + $0x104] sm:$0xf0]  ;;  %v1614_v41 = vld [vmem:[#allocation2 + $0x108] sm:$0xf0]  ;;  %v1589_v30 = vor.u32 %v1741_v7, %v1588_v50 }
  0xc1   :  { %v545_v32 = vsel %vm536_vm1, %v1975_v38, %v544_v20  ;;  %218 = vst [vmem:[#allocation2 + $0x68] sm:$0xff] %v202_v54  ;;  %v1612_v43 = vld [vmem:[#allocation2 + $0xf0] sm:$0xf]  ;;  %v1744_v44 = vld [vmem:[#allocation2 + $0xf4] sm:$0xf]  ;;  %v126_v7 = vrot.slane %v2113_v17, 4 }
  0xc2   :  { %558 = vst [vmem:[#allocation2 + $0x1a0] sm:$0xff] %v545_v32  ;;  %v1613_v45 = vor.u32 %v1747_v34, %v1612_v43  ;;  %v1617_v23 = vor.u32 %v1744_v44, %v1614_v41  ;;  %v1745_v32 = vld [vmem:[#allocation2 + $0xfc] sm:$0xf]  ;;  %v1622_v43 = vld [vmem:[#allocation2 + $0x110] sm:$0xf0] }
  0xc3   :  { %491 = vst [vmem:[#allocation2 + $0x160] sm:$0xff] %v476_v18  ;;  %v1649_v18 = vor.u32 %v1751_v27, %v1646_v5 }
  0xc4   :  { %901 = vmatpush.bf16.msra.mxu0 %v1613_v45  ;;  %929 = vmatpush.bf16.msra.mxu2 %v1617_v23  ;;  %v2170_v40 = vpop.permute.xlu1 %186  ;;  %v2172_v31 = vpop.permute.xlu2 %47 }
  0xc5   :  { %v2174_v46 = vpop.permute.xlu0 %184  ;;  %v196_v47 = vrot.slane %v2170_v40, 4 }
  0xc6   :  { %v195_v38 = vrot.slane %v2174_v46, 4 }
  0xc8   :  { %v207_v56 = vsel %vm67_vm0, %v195_v38, %v196_v47  ;;  %902 = vmatpush.bf16.msra.mxu0 %v1589_v30  ;;  %930 = vmatpush.bf16.msra.mxu2 %v1593_v16  ;;  %v1548_v44 = vld [vmem:[#allocation2 + $0x68] sm:$0xf]  ;;  %v1739_v30 = vld [vmem:[#allocation2 + $0xcc] sm:$0xf]  ;;  %v1598_v16 = vld [vmem:[#allocation2 + $0xe0] sm:$0xf0] }
  0xc9   :  { %v208_v59 = vsel %vm199_vm7, %v2174_v46, %v207_v56  ;;  %v1766_v61 = vld [vmem:[#allocation2 + $0x19c] sm:$0xf0]  ;;  %v1625_v56 = vor.u32 %v1745_v32, %v1622_v43 }
  0xca   :  { %221 = vst [vmem:[#allocation2 + $0x80] sm:$0xff] %v208_v59  ;;  %v1693_v62 = vor.u32 %v1766_v61, %v1692_v60 }
  0xcc   :  { %976 = vmatpush.bf16.msrb.mxu3 %v1693_v62  ;;  %v2186_v1 = vpop.permute.xlu1 %119  ;;  %v175_v3 = vpop.permute.xlu2 %174  ;;  %v1601_v62 = vor.u32 %v1739_v30, %v1598_v16 }
  0xcd   :  { %v130_v12 = vrot.slane %v2186_v1, 4  ;;  %v2189_v6 = vpop.permute.xlu0 %113  ;;  %v190_v50 = vrot.slane %v175_v3, 4 }
  0xce   :  { %v127_v52 = vrot.slane %v2189_v6, 4 }
  0xcf   :  { %v142_v20 = vsel %vm67_vm0, %v130_v12, %v131_v63  ;;  %v198_v54 = vsel %vm67_vm0, %v190_v50, %v191_v37  ;;  %1708 = vmatmul.msk.bf16.vlgmr.msrb.gmra.mxu3 %vm895_vm5, %v2115_v19 }
  0xd0   :  { %983 = vmatpush.bf16.msra.mxu3 %v1673_v0  ;;  %v143_v34 = vsel %vm134_vm8, %v2186_v1, %v142_v20  ;;  %v136_v41 = vsel %vm67_vm0, %v126_v7, %v127_v52  ;;  %v200_v42 = vsel %vm199_vm7, %v175_v3, %v198_v54 }
  0xd1   :  { %156 = vst [vmem:[#allocation2 + $0x50] sm:$0xff] %v143_v34  ;;  %v137_v37 = vsel %vm134_vm8, %v2113_v17, %v136_v41  ;;  %v1730_v45 = vld [vmem:[#allocation2 + $0x7c] sm:$0xf0]  ;;  %v1574_v34 = vld [vmem:[#allocation2 + $0xb0] sm:$0xf0] }
  0xd2   :  { %153 = vst [vmem:[#allocation2 + $0x38] sm:$0xff] %v137_v37  ;;  %v1549_v23 = vor.u32 %v1730_v45, %v1548_v44  ;;  %v1550_v32 = vld [vmem:[#allocation2 + $0x80] sm:$0xf0]  ;;  %v1727_v45 = vld [vmem:[#allocation2 + $0x6c] sm:$0xf] }
  0xd3   :  { %217 = vst [vmem:[#allocation2 + $0x60] sm:$0xff] %v200_v42  ;;  %v1553_v16 = vor.u32 %v1727_v45, %v1550_v32 }
  0xd4   :  { %984 = vmatpush.bf16.msra.mxu3 %v1649_v18  ;;  %960 = vmatpush.bf16.msrb.mxu1 %v1549_v23  ;;  %v248_v57 = vpop.permute.xlu1 %247  ;;  %v396_v58 = vpop.permute.xlu2 %395  ;;  %v1733_v18 = vld [vmem:[#allocation2 + $0x9c] sm:$0xf] }
  0xd5   :  { %v259_v59 = vrot.slane %v248_v57, 4  ;;  %v240_v60 = vpop.permute.xlu0 %239  ;;  %v404_v61 = vrot.slane %v396_v58, 4  ;;  %v1577_v42 = vor.u32 %v1733_v18, %v1574_v34 }
  0xd6   :  { %v255_v0 = vrot.slane %v240_v60, 4 }
  0xd7   :  { %v270_v3 = vsel %vm67_vm0, %v259_v59, %v260_v21  ;;  %v416_v27 = vsel %vm67_vm0, %v403_v49, %v404_v61  ;;  %v61_v49 = vrot.slane %v2172_v31, 4 }
  0xd8   :  { %985 = vmatpush.bf16.msra.mxu3 %v1625_v56  ;;  %v271_v5 = vsel %vm264_vm6, %v248_v57, %v270_v3  ;;  %v263_v50 = vsel %vm67_vm0, %v255_v0, %v256_v25  ;;  %v417_v20 = vsel %vm406_vm3, %v1936_v22, %v416_v27  ;;  %v1724_v54 = vld [vmem:[#allocation2 + $0x4c] sm:$0xf0]  ;;  %v1526_v56 = vld [vmem:[#allocation2 + $0x50] sm:$0xf0] }
  0xd9   :  { %285 = vst [vmem:[#allocation2 + $0xa8] sm:$0xff] %v271_v5  ;;  %v265_v14 = vsel %vm264_vm6, %v240_v60, %v263_v50  ;;  %v1524_v21 = vld [vmem:[#allocation2 + $0x38] sm:$0xf]  ;;  %v1721_v61 = vld [vmem:[#allocation2 + $0x3c] sm:$0xf] }
  0xda   :  { %282 = vst [vmem:[#allocation2 + $0x90] sm:$0xff] %v265_v14  ;;  %v1525_v41 = vor.u32 %v1724_v54, %v1524_v21 }
  0xdb   :  { %429 = vst [vmem:[#allocation2 + $0x148] sm:$0xff] %v417_v20 }
  0xdc   :  { %986 = vmatpush.bf16.msra.mxu3 %v1601_v62  ;;  %961 = vmatpush.bf16.msrb.mxu1 %v1525_v41  ;;  %v323_v51 = vpop.permute.xlu2 %322  ;;  %v2225_v25 = vpop.permute.xlu1 %45 }
  0xdd   :  { %v461_v22 = vpop.permute.xlu0 %460  ;;  %v335_v43 = vrot.slane %v323_v51, 4  ;;  %v60_v37 = vrot.slane %v2225_v25, 4 }
  0xde   :  { %v469_v44 = vrot.slane %v461_v22, 4 }
  0xdf   :  { %v345_v23 = vsel %vm67_vm0, %v334_v10, %v335_v43  ;;  %v71_v30 = vsel %vm67_vm0, %v60_v37, %v61_v49 }
  0xe0   :  { %987 = vmatpush.bf16.msra.mxu3 %v1577_v42  ;;  %v481_v57 = vsel %vm67_vm0, %v468_v29, %v469_v44  ;;  %v346_v58 = vsel %vm341_vm4, %v2026_v8, %v345_v23  ;;  %v72_v59 = vsel %vm69_vm9, %v2225_v25, %v71_v30  ;;  %v1735_v60 = vld [vmem:[#allocation2 + $0xa4] sm:$0xf0]  ;;  %v1566_v10 = vld [vmem:[#allocation2 + $0xa8] sm:$0xf0]  ;;  %v1529_v29 = vor.u32 %v1721_v61, %v1526_v56 }
  0xe1   :  { %v482_v62 = vsel %vm471_vm2, %v1949_v26, %v481_v57  ;;  %361 = vst [vmem:[#allocation2 + $0x100] sm:$0xff] %v346_v58  ;;  %v1564_v0 = vld [vmem:[#allocation2 + $0x90] sm:$0xf]  ;;  %v1732_v3 = vld [vmem:[#allocation2 + $0x94] sm:$0xf] }
  0xe2   :  { %494 = vst [vmem:[#allocation2 + $0x178] sm:$0xff] %v482_v62  ;;  %v1565_v27 = vor.u32 %v1735_v60, %v1564_v0  ;;  %v1569_v5 = vor.u32 %v1732_v3, %v1566_v10  ;;  %v1694_v57 = vld [vmem:[#allocation2 + $0x1a0] sm:$0xf0]  ;;  %v1484_v58 = vld [vmem:[%s2640_s1] sm:$0xf]  ;;  %v293_v60 = vld [vmem:[%s2639_s0 + $0x34] sm:$0xff] }
  0xe3   :  { %88 = vst [vmem:[#allocation2 + $0x8] sm:$0xff] %v72_v59  ;;  %v1763_v62 = vld [vmem:[#allocation2 + $0x18c] sm:$0xf] }
  0xe4   :  { %988 = vmatpush.bf16.msra.mxu3 %v1553_v16  ;;  %903 = vmatpush.bf16.msra.mxu0 %v1565_v27  ;;  %v52_v8 = vpop.permute.xlu2 %51  ;;  %v2245_v50 = vpop.permute.xlu1 %55  ;;  %v1697_v3 = vor.u32 %v1763_v62, %v1694_v57  ;;  %299 = vst [vmem:[#allocation2 + $0xe8] sm:$0xff] %v293_v60 }
  0xe5   :  { %931 = vmatpush.bf16.msra.mxu2 %v1569_v5  ;;  %v54_v20 = vpop.permute.xlu0 %53  ;;  %v63_v54 = vrot.slane %v52_v8, 4  ;;  %v65_v18 = vrot.slane %v2245_v50, 4 }
  0xe6   :  { %v64_v26 = vrot.slane %v54_v20, 4 }
  0xe8   :  { %989 = vmatpush.bf16.msra.mxu3 %v1529_v29  ;;  %v75_v34 = vsel %vm67_vm0, %v63_v54, %v64_v26  ;;  %v77_v14 = vsel %vm67_vm0, %v64_v26, %v65_v18 }
  0xe9   :  { %v76_v21 = vsel %vm69_vm9, %v52_v8, %v75_v34  ;;  %v78_v41 = vsel %vm69_vm9, %v54_v20, %v77_v14  ;;  %v1761_v60 = vld [vmem:[#allocation2 + $0x174] sm:$0xf0] }
  0xea   :  { %90 = vst [vmem:[#allocation2 + $0x18] sm:$0xff] %v76_v21  ;;  %v1500_v46 = vld [vmem:[#allocation2 + $0x8] sm:$0xf] }
  0xeb   :  { %91 = vst [vmem:[#allocation2 + $0x20] sm:$0xff] %v78_v41 }
  0xec   :  { %v181_v42 = vpop.permute.xlu2 %180  ;;  %v388_v51 = vpop.permute.xlu1 %387 }
  0xed   :  { %v183_v32 = vpop.permute.xlu0 %182  ;;  %v193_v22 = vrot.slane %v181_v42, 4  ;;  %v400_v43 = vrot.slane %v388_v51, 4  ;;  %v1540_v42 = vld [vmem:[#allocation2 + $0x60] sm:$0xf]  ;;  %v1726_v51 = vld [vmem:[#allocation2 + $0x64] sm:$0xf] }
  0xee   :  { %v194_v44 = vrot.slane %v183_v32, 4 }
  0xef   :  { %v203_v45 = vsel %vm67_vm0, %v192_v2, %v193_v22  ;;  %v410_v23 = vsel %vm67_vm0, %v399_v55, %v400_v43  ;;  %v1713_v2 = vld [vmem:[%s2640_s1 + $0x4] sm:$0xf0] }
  0xf0   :  { %v205_v30 = vsel %vm67_vm0, %v194_v44, %v195_v38  ;;  %v204_v16 = vsel %vm199_vm7, %v2090_v48, %v203_v45  ;;  %v411_v56 = vsel %vm406_vm3, %v1996_v53, %v410_v23  ;;  %v1715_v38 = vld [vmem:[#allocation2 + $0xc] sm:$0xf]  ;;  %v290_v48 = vld [vmem:[%s2639_s0 + $0x14] sm:$0xff]  ;;  %v2280_v5 = vor.u32 %v1713_v2, %v1484_v58 }
  0xf1   :  { %v206_v55 = vsel %vm199_vm7, %v183_v32, %v205_v30  ;;  %219 = vst [vmem:[#allocation2 + $0x70] sm:$0xff] %v204_v16  ;;  %v1717_v62 = vld [vmem:[#allocation2 + $0x14] sm:$0xf0] }
  0xf2   :  { %220 = vst [vmem:[#allocation2 + $0x78] sm:$0xff] %v206_v55  ;;  %v1718_v53 = vld [vmem:[#allocation2 + $0x1c] sm:$0xf0]  ;;  %v1502_v59 = vld [vmem:[#allocation2 + $0x20] sm:$0xf0] }
  0xf3   :  { %426 = vst [vmem:[#allocation2 + $0x130] sm:$0xff] %v411_v56  ;;  %v1501_v10 = vor.u32 %v1718_v53, %v1500_v46  ;;  %v1505_v61 = vor.u32 %v1715_v38, %v1502_v59 }
  0xf4   :  { %v526_v0 = vpop.permute.xlu2 %525  ;;  %v118_v27 = vpop.permute.xlu1 %117  ;;  %296 = vst [vmem:[#allocation2 + $0xd0] sm:$0xff] %v290_v48 }
  0xf5   :  { %962 = vmatpush.bf16.msrb.mxu1 %v1501_v10  ;;  %990 = vmatpush.bf16.msra.mxu3 %v1505_v61  ;;  %v110_v29 = vpop.permute.xlu0 %109  ;;  %v534_v8 = vrot.slane %v526_v0, 4  ;;  %v129_v20 = vrot.slane %v118_v27, 4  ;;  %v1678_v10 = vld [vmem:[#allocation2 + $0x178] sm:$0xf0] }
  0xf6   :  { %v125_v54 = vrot.slane %v110_v29, 4  ;;  %v1494_v0 = vld [vmem:[#allocation2 + $0x18] sm:$0xf0] }
  0xf7   :  { %v546_v26 = vsel %vm67_vm0, %v533_v11, %v534_v8  ;;  %v140_v34 = vsel %vm67_vm0, %v129_v20, %v130_v12  ;;  %v1758_v8 = vld [vmem:[#allocation2 + $0x164] sm:$0xf] }
  0xf8   :  { %v133_v14 = vsel %vm67_vm0, %v125_v54, %v126_v7  ;;  %v547_v21 = vsel %vm536_vm1, %v2151_v4, %v546_v26  ;;  %v141_v41 = vsel %vm134_vm8, %v118_v27, %v140_v34  ;;  %991 = vmatmul.bf16.vlgmr.msra.gmra.mxu3 %v2280_v5  ;;  %963 = vmatmul.bf16.vlgmr.msrb.gmra.mxu1 %v2280_v5 }
  0xf9   :  { %1004 = vmatpush.bf16.msrb.mxu3 %v1697_v3  ;;  %v135_v11 = vsel %vm134_vm8, %v110_v29, %v133_v14  ;;  %559 = vst [vmem:[#allocation2 + $0x1a8] sm:$0xff] %v547_v21  ;;  %v1729_v1 = vld [vmem:[#allocation2 + $0x74] sm:$0xf0]  ;;  %v1542_v12 = vld [vmem:[#allocation2 + $0x78] sm:$0xf0] }
  0xfa   :  { %152 = vst [vmem:[#allocation2 + $0x30] sm:$0xff] %v135_v11  ;;  %v1541_v17 = vor.u32 %v1729_v1, %v1540_v42  ;;  %v1545_v32 = vor.u32 %v1726_v51, %v1542_v12  ;;  %v1652_v26 = vld [vmem:[#allocation2 + $0x130] sm:$0xf]  ;;  %v1752_v21 = vld [vmem:[#allocation2 + $0x134] sm:$0xf] }
  0xfb   :  { %155 = vst [vmem:[#allocation2 + $0x48] sm:$0xff] %v141_v41  ;;  %v1755_v41 = vld [vmem:[#allocation2 + $0x144] sm:$0xf0]  ;;  %v1654_v11 = vld [vmem:[#allocation2 + $0x148] sm:$0xf0] }
  0xfc   :  { %904 = vmatpush.bf16.msra.mxu0 %v1541_v17  ;;  %932 = vmatpush.bf16.msra.mxu2 %v1545_v32  ;;  %v50_v4 = vpop.permute.xlu2 %49  ;;  %v44_v7 = vpop.permute.xlu1 %43  ;;  %v1653_v51 = vor.u32 %v1755_v41, %v1652_v26  ;;  %v1657_v17 = vor.u32 %v1752_v21, %v1654_v11 }
  0xfd   :  { %v331_v22 = vpop.permute.xlu0 %330  ;;  %v62_v43 = vrot.slane %v50_v4, 4  ;;  %v59_v44 = vrot.slane %v44_v7, 4  ;;  %v1628_v4 = vld [vmem:[#allocation2 + $0x100] sm:$0xf] }
  0xfe   :  { %v339_v45 = vrot.slane %v331_v22, 4  ;;  %v1746_v22 = vld [vmem:[#allocation2 + $0x104] sm:$0xf] }
  0xff   :  { %v73_v23 = vsel %vm67_vm0, %v61_v49, %v62_v43  ;;  %v68_v30 = vsel %vm67_vm0, %v59_v44, %v60_v37  ;;  %v1743_v43 = vld [vmem:[#allocation2 + $0xe4] sm:$0xf0]  ;;  %v1740_v44 = vld [vmem:[#allocation2 + $0xd4] sm:$0xf] }
 0x100   :  { %v351_v16 = vsel %vm67_vm0, %v338_v39, %v339_v45  ;;  %v74_v56 = vsel %vm69_vm9, %v2172_v31, %v73_v23  ;;  %v70_v57 = vsel %vm69_vm9, %v44_v7, %v68_v30 }
 0x101   :  { %v352_v58 = vsel %vm341_vm4, %v2055_v35, %v351_v16  ;;  %89 = vst [vmem:[#allocation2 + $0x10] sm:$0xff] %v74_v56  ;;  %v1516_v2 = vld [vmem:[#allocation2 + $0x30] sm:$0xf]  ;;  %v1720_v55 = vld [vmem:[#allocation2 + $0x34] sm:$0xf] }
 0x102   :  { %364 = vst [vmem:[#allocation2 + $0x118] sm:$0xff] %v352_v58  ;;  %v1723_v49 = vld [vmem:[#allocation2 + $0x44] sm:$0xf0]  ;;  %v1518_v25 = vld [vmem:[#allocation2 + $0x48] sm:$0xf0] }
 0x103   :  { %87 = vst [vmem:[#allocation2] sm:$0xff] %v70_v57  ;;  %v1517_v37 = vor.u32 %v1723_v49, %v1516_v2  ;;  %v1521_v46 = vor.u32 %v1720_v55, %v1518_v25  ;;  %v1767_v55 = vld [vmem:[#allocation2 + $0x1a4] sm:$0xf0]  ;;  %v1702_v25 = vld [vmem:[#allocation2 + $0x1a8] sm:$0xf0] }
 0x104   :  { %v254_v38 = vpop.permute.xlu1 %253 }
 0x105   :  { %905 = vmatpush.bf16.msra.mxu0 %v1517_v37  ;;  %933 = vmatpush.bf16.msra.mxu2 %v1521_v46  ;;  %v246_v39 = vpop.permute.xlu0 %245  ;;  %v262_v48 = vrot.slane %v254_v38, 4 }
 0x106   :  { %v258_v31 = vrot.slane %v246_v39, 4 }
 0x107   :  { %v274_v53 = vsel %vm67_vm0, %v261_v13, %v262_v48 }
 0x108   :  { %v268_v35 = vsel %vm67_vm0, %v257_v28, %v258_v31  ;;  %v275_v59 = vsel %vm264_vm6, %v2028_v9, %v274_v53  ;;  %1709 = vmatmul.msk.bf16.vlgmr.msrb.gmra.mxu3 %vm895_vm5, %v2115_v19  ;;  %v1676_v28 = vld [vmem:[#allocation2 + $0x160] sm:$0xf]  ;;  %v1681_v9 = vor.u32 %v1758_v8, %v1678_v10  ;;  %v1716_v21 = vld [vmem:[#allocation2 + $0x14] sm:$0xf] }
 0x109   :  { %v269_v61 = vsel %vm264_vm6, %v2118_v24, %v268_v35  ;;  %287 = vst [vmem:[#allocation2 + $0xb8] sm:$0xff] %v275_v59  ;;  %v1677_v20 = vor.u32 %v1761_v60, %v1676_v28  ;;  %v1630_v7 = vld [vmem:[#allocation2 + $0x118] sm:$0xf0] }
 0x10a   :  { %284 = vst [vmem:[#allocation2 + $0xa0] sm:$0xff] %v269_v61  ;;  %v1492_v13 = vld [vmem:[#allocation2] sm:$0xf]  ;;  %v1714_v3 = vld [vmem:[#allocation2 + $0x4] sm:$0xf]  ;;  %v1633_v23 = vor.u32 %v1746_v22, %v1630_v7 }
 0x10b   :  { %v1493_v27 = vor.u32 %v1717_v62, %v1492_v13  ;;  %v1497_v29 = vor.u32 %v1714_v3, %v1494_v0  ;;  %v1556_v0 = vld [vmem:[#allocation2 + $0x70] sm:$0xf] }
 0x10c   :  { %v518_v54 = vpop.permute.xlu1 %517 }
 0x10d   :  { %906 = vmatpush.bf16.msra.mxu0 %v1493_v27  ;;  %934 = vmatpush.bf16.msra.mxu2 %v1497_v29  ;;  %v189_v34 = vpop.permute.xlu0 %188  ;;  %v530_v14 = vrot.slane %v518_v54, 4 }
 0x10e   :  { %v197_v24 = vrot.slane %v189_v34, 4  ;;  %v1508_v34 = vld [vmem:[#allocation2 + $0x10] sm:$0xf] }
 0x10f   :  { %v540_v42 = vsel %vm67_vm0, %v529_v36, %v530_v14  ;;  %v1749_v36 = vld [vmem:[#allocation2 + $0x114] sm:$0xf0] }
 0x110   :  { %v209_v1 = vsel %vm67_vm0, %v196_v47, %v197_v24  ;;  %v541_v12 = vsel %vm536_vm1, %v2053_v33, %v540_v42  ;;  %907 = vmatmul.bf16.vlgmr.msra.gmra.mxu0 %v2280_v5  ;;  %935 = vmatmul.bf16.vlgmr.msra.gmra.mxu2 %v2280_v5  ;;  %v1604_v47 = vld [vmem:[#allocation2 + $0xd0] sm:$0xf]  ;;  %v1606_v33 = vld [vmem:[#allocation2 + $0xe8] sm:$0xf0]  ;;  %v1629_v45 = vor.u32 %v1749_v36, %v1628_v4  ;;  %v1737_v49 = vld [vmem:[#allocation2 + $0xb4] sm:$0xf0] }
 0x111   :  { %1011 = vmatpush.bf16.msrb.mxu2 %v1677_v20  ;;  %1039 = vmatpush.bf16.msrb.mxu0 %v1681_v9  ;;  %v210_v32 = vsel %vm199_vm7, %v2170_v40, %v209_v1  ;;  %556 = vst [vmem:[#allocation2 + $0x190] sm:$0xff] %v541_v12  ;;  %v1605_v40 = vor.u32 %v1743_v43, %v1604_v47  ;;  %v1582_v39 = vld [vmem:[#allocation2 + $0xb8] sm:$0xf0]  ;;  %v1580_v35 = vld [vmem:[#allocation2 + $0xa0] sm:$0xf] }
 0x112   :  { %222 = vst [vmem:[#allocation2 + $0x88] sm:$0xff] %v210_v32  ;;  %v1609_v58 = vor.u32 %v1740_v44, %v1606_v33  ;;  %v1581_v60 = vor.u32 %v1737_v49, %v1580_v35  ;;  %v1067_v36 = vld [vmem:[%s2641_s4] sm:$0x3f] }
 0x113   :  { %v1068_v47 = vunpack.c.l.bf16 %v1067_v36 }
 0x114   :  { %v124_v30 = vpop.permute.xlu1 %123 }
 0x115   :  { %1012 = vmatpush.bf16.msrb.mxu2 %v1653_v51  ;;  %1040 = vmatpush.bf16.msrb.mxu0 %v1657_v17  ;;  %v116_v16 = vpop.permute.xlu0 %115  ;;  %v132_v56 = vrot.slane %v124_v30, 4  ;;  %v1073_v43 = vperm.slane %v1068_v47, 2 }
 0x116   :  { %v128_v57 = vrot.slane %v116_v16, 4 }
 0x117   :  { %v144_v2 = vsel %vm67_vm0, %v131_v63, %v132_v56  ;;  %v1734_v63 = vld [vmem:[#allocation2 + $0xa4] sm:$0xf] }
 0x118   :  { %v138_v37 = vsel %vm67_vm0, %v127_v52, %v128_v57  ;;  %v145_v46 = vsel %vm134_vm8, %v2140_v15, %v144_v2  ;;  %v1700_v38 = vld [vmem:[#allocation2 + $0x190] sm:$0xf]  ;;  %v1764_v48 = vld [vmem:[#allocation2 + $0x194] sm:$0xf]  ;;  %v1585_v52 = vor.u32 %v1734_v63, %v1582_v39  ;;  %v1075_v2 = vperm.slane %v1068_v47, 6 }
 0x119   :  { %1013 = vmatpush.bf16.msrb.mxu2 %v1629_v45  ;;  %1041 = vmatpush.bf16.msrb.mxu0 %v1633_v23  ;;  %v139_v31 = vsel %vm134_vm8, %v2189_v6, %v138_v37  ;;  %157 = vst [vmem:[#allocation2 + $0x58] sm:$0xff] %v145_v46  ;;  %v1701_v53 = vor.u32 %v1767_v55, %v1700_v38  ;;  %v1731_v15 = vld [vmem:[#allocation2 + $0x84] sm:$0xf0]  ;;  %v1558_v61 = vld [vmem:[#allocation2 + $0x88] sm:$0xf0]  ;;  %v1085_v45 = vperm.slane %v1073_v43, 0 }
 0x11a   :  { %v1705_v59 = vor.u32 %v1764_v48, %v1702_v25  ;;  %154 = vst [vmem:[#allocation2 + $0x40] sm:$0xff] %v139_v31  ;;  %v1728_v6 = vld [vmem:[#allocation2 + $0x74] sm:$0xf]  ;;  %v1557_v3 = vor.u32 %v1731_v15, %v1556_v0  ;;  %v1074_v23 = vperm.slane %v1068_v47, 4  ;;  %v1069_v25 = vunpack.c.h.bf16 %v1067_v36 }
 0x11b   :  { %1032 = vmatpush.bf16.msra.mxu1 %v1701_v53  ;;  %v1561_v27 = vor.u32 %v1728_v6, %v1558_v61  ;;  %v1087_v48 = vperm.slane %v1075_v2, 0 }
 0x11c   :  { %v1086_v49 = vperm.slane %v1074_v23, 0  ;;  %v1076_v53 = vperm.slane %v1069_v25, 0 }
 0x11d   :  { %1014 = vmatpush.bf16.msrb.mxu2 %v1605_v40  ;;  %1042 = vmatpush.bf16.msrb.mxu0 %v1609_v58  ;;  %v58_v10 = vpop.permute.xlu0 %57 }
 0x11e   :  { %v66_v62 = vrot.slane %v58_v10, 4  ;;  %1710 = vmatmul.msk.bf16.vlgmr.msra.gmra.mxu1 %vm895_vm5, %v2115_v19  ;;  %v1088_v6 = vperm.slane %v1076_v53, 0 }
 0x11f   :  { %1060 = vmatpush.bf16.msrb.mxu1 %v1705_v59 }
 0x120   :  { %v79_v13 = vsel %vm67_vm0, %v65_v18, %v66_v62  ;;  %v1725_v29 = vld [vmem:[#allocation2 + $0x54] sm:$0xf0]  ;;  %v1534_v28 = vld [vmem:[#allocation2 + $0x58] sm:$0xf0] }
 0x121   :  { %1015 = vmatpush.bf16.msrb.mxu2 %v1581_v60  ;;  %1043 = vmatpush.bf16.msrb.mxu0 %v1585_v52  ;;  %v80_v8 = vsel %vm69_vm9, %v2245_v50, %v79_v13  ;;  %v1532_v20 = vld [vmem:[#allocation2 + $0x40] sm:$0xf]  ;;  %v1722_v9 = vld [vmem:[#allocation2 + $0x44] sm:$0xf]  ;;  %v1077_v60 = vperm.slane %v1069_v25, 2 }
 0x122   :  { %92 = vst [vmem:[#allocation2 + $0x28] sm:$0xff] %v80_v8  ;;  %v1533_v54 = vor.u32 %v1725_v29, %v1532_v20  ;;  %v1537_v26 = vor.u32 %v1722_v9, %v1534_v28 }
 0x123   :  { %v1089_v29 = vperm.slane %v1077_v60, 0 }
 0x125   :  { %1016 = vmatpush.bf16.msrb.mxu2 %v1557_v3  ;;  %1044 = vmatpush.bf16.msrb.mxu0 %v1561_v27 }
 0x129   :  { %1017 = vmatpush.bf16.msrb.mxu2 %v1533_v54  ;;  %1045 = vmatpush.bf16.msrb.mxu0 %v1537_v26  ;;  %v1719_v14 = vld [vmem:[#allocation2 + $0x24] sm:$0xf0]  ;;  %v1510_v18 = vld [vmem:[#allocation2 + $0x28] sm:$0xf0] }
 0x12a   :  { %v1509_v24 = vor.u32 %v1719_v14, %v1508_v34  ;;  %v1513_v41 = vor.u32 %v1716_v21, %v1510_v18  ;;  %v922_v51 = vpop.f32.mrf.mxu1 }
 0x12d   :  { %1018 = vmatpush.bf16.msrb.mxu2 %v1509_v24  ;;  %1046 = vmatpush.bf16.msrb.mxu0 %v1513_v41 }
 0x12e   :  { %1711 = vmatmul.msk.bf16.vlgmr.msrb.gmra.mxu1 %vm895_vm5, %v2115_v19  ;;  %v1072_v19 = vperm.slane %v1068_v47, 0 }
 0x130   :  { %1019 = vmatmul.bf16.vlgmr.msrb.gmra.mxu2 %v2280_v5  ;;  %1047 = vmatmul.bf16.vlgmr.msrb.gmra.mxu0 %v2280_v5  ;;  %v950_v50 = vpop.f32.mrf.mxu3  ;;  %v1084_v56 = vperm.slane %v1072_v19, 0 }
 0x132   :  { %v924_v1 = vpop.f32.mrf.mxu1 }
 0x138   :  { %v952_v42 = vpop.f32.mrf.mxu3 }
 0x152   :  { %v978_v11 = vpop.f32.mrf.mxu3 }
 0x15a   :  { %v980_v12 = vpop.f32.mrf.mxu3 }
 0x175   :  { %v964_v17 = vpop.f32.mrf.mxu1 }
 0x176   :  { %v2364_v55 = vadd.f32 %v978_v11, %v964_v17 }
 0x178   :  { %v1092_v31 = vmul.f32 %v1086_v49, %v2364_v55 }
 0x17a   :  { %v1118_v0 = vmul.f32 %v1092_v31, %v2364_v55 }
 0x17b   :  { %v992_v32 = vpop.f32.mrf.mxu3 }
 0x17d   :  { %v966_v4 = vpop.f32.mrf.mxu1 }
 0x17e   :  { %v2381_v8 = vadd.f32 %v980_v12, %v966_v4 }
 0x183   :  { %v994_v5 = vpop.f32.mrf.mxu3 }
 0x18b   :  { %v1006_v58 = vpop.f32.mrf.mxu3 }
 0x18c   :  { %v2368_v39 = vadd.f32 %v1006_v58, %v992_v32 }
 0x18d   :  { %v908_v7 = vpop.f32.mrf.mxu0 }
 0x18e   :  { %v2361_v16 = vadd.f32 %v922_v51, %v908_v7  ;;  %v1093_v62 = vmul.f32 %v1087_v48, %v2368_v39 }
 0x190   :  { %v1090_v37 = vmul.f32 %v1084_v56, %v2361_v16  ;;  %v1119_v54 = vmul.f32 %v1093_v62, %v2368_v39 }
 0x192   :  { %v1116_v35 = vmul.f32 %v1090_v37, %v2361_v16 }
 0x193   :  { %v936_v44 = vpop.f32.mrf.mxu2  ;;  %v1008_v3 = vpop.f32.mrf.mxu3 }
 0x194   :  { %v2359_v33 = vadd.f32 %v950_v50, %v936_v44  ;;  %v2387_v14 = vadd.f32 %v1008_v3, %v994_v5  ;;  %v1098_v50 = vmul.f32 %v1086_v49, %v2381_v8 }
 0x195   :  { %v910_v57 = vpop.f32.mrf.mxu0 }
 0x196   :  { %v1091_v40 = vmul.f32 %v1085_v45, %v2359_v33  ;;  %v2374_v61 = vadd.f32 %v924_v1, %v910_v57  ;;  %v1099_v17 = vmul.f32 %v1087_v48, %v2387_v14  ;;  %v1124_v23 = vmul.f32 %v1098_v50, %v2381_v8 }
 0x198   :  { %v1117_v38 = vmul.f32 %v1091_v40, %v2359_v33  ;;  %v1102_v63 = vadd.f32 %v1091_v40, %v1090_v37  ;;  %v1096_v9 = vmul.f32 %v1084_v56, %v2374_v61  ;;  %v1125_v40 = vmul.f32 %v1099_v17, %v2387_v14 }
 0x19a   :  { %v1128_v15 = vadd.f32 %v1117_v38, %v1116_v35  ;;  %v1103_v28 = vadd.f32 %v1102_v63, %v1092_v31  ;;  %v1122_v12 = vmul.f32 %v1096_v9, %v2374_v61  ;;  %v1803_v31 = vmov 0   ;;  %v1210_v35 = vld [vmem:[%s2642_s3] sm:$0xff] }
 0x19b   :  { %v1034_v22 = vpop.f32.mrf.mxu1  ;;  %v938_v46 = vpop.f32.mrf.mxu2  ;;  %1778 = vset.pattern.permute.xlu1 %v1803_v31  ;;  %1780 = vset.pattern.permute.xlu0 %v1803_v31 }
 0x19c   :  { %v2372_v59 = vadd.f32 %v952_v42, %v938_v46  ;;  %v1129_v34 = vadd.f32 %v1128_v15, %v1118_v0  ;;  %v1104_v41 = vadd.f32 %v1103_v28, %v1093_v62  ;;  %1779 = vset.pattern.permute.xlu2 %v1803_v31 }
 0x19e   :  { %v1097_v13 = vmul.f32 %v1085_v45, %v2372_v59  ;;  %v1130_v1 = vadd.f32 %v1129_v34, %v1119_v54 }
 0x1a0   :  { %v1109_v21 = vadd.f32 %v1097_v13, %v1096_v9  ;;  %v1123_v42 = vmul.f32 %v1097_v13, %v2372_v59 }
 0x1a2   :  { %v1110_v47 = vadd.f32 %v1109_v21, %v1098_v50  ;;  %v1135_v43 = vadd.f32 %v1123_v42, %v1122_v12 }
 0x1a3   :  { %v1036_v30 = vpop.f32.mrf.mxu1 }
 0x1a4   :  { %v1111_v57 = vadd.f32 %v1110_v47, %v1099_v17  ;;  %v1136_v49 = vadd.f32 %v1135_v43, %v1124_v23  ;;  %v1211_v17 = vld [vmem:[%s2642_s3 + $0x8] sm:$0xff]  ;;  %v1804_v47 = vmov 0.0  }
 0x1a5   :  { %1248 = vst [vmem:[%s2644_s5 + $0x38] sm:$0xff] %v1804_v47 }
 0x1a6   :  { %1249 = vst [vmem:[%s2644_s5 + $0x78] sm:$0xff] %v1804_v47 }
 0x1a7   :  { %1246 = vst [vmem:[%s2644_s5] sm:$0xff] %v1804_v47 }
 0x1a8   :  { %1247 = vst [vmem:[%s2644_s5 + $0x40] sm:$0xff] %v1804_v47 }
 0x1ab   :  { %v1062_v10 = vpop.f32.mrf.mxu1 }
 0x1ad   :  { %v1048_v52 = vpop.f32.mrf.mxu0 }
 0x1ae   :  { %v2379_v27 = vadd.f32 %v1062_v10, %v1048_v52 }
 0x1b0   :  { %v1095_v24 = vmul.f32 %v1089_v29, %v2379_v27 }
 0x1b2   :  { %v1121_v7 = vmul.f32 %v1095_v24, %v2379_v27 }
 0x1b3   :  { %v1020_v20 = vpop.f32.mrf.mxu2  ;;  %v1064_v4 = vpop.f32.mrf.mxu1 }
 0x1b4   :  { %v2385_v26 = vadd.f32 %v1034_v22, %v1020_v20 }
 0x1b5   :  { %v1050_v32 = vpop.f32.mrf.mxu0 }
 0x1b6   :  { %v1094_v18 = vmul.f32 %v1088_v6, %v2385_v26  ;;  %v2397_v44 = vadd.f32 %v1064_v4, %v1050_v32  ;;  %v1151_v4 = vld [vmem:[%s2643_s2 + $0x8] sm:$0xff] }
 0x1b8   :  { %v1120_v51 = vmul.f32 %v1094_v18, %v2385_v26  ;;  %v1105_v11 = vadd.f32 %v1104_v41, %v1094_v18  ;;  %v1101_v58 = vmul.f32 %v1089_v29, %v2397_v44 }
 0x1ba   :  { %v1106_v36 = vadd.f32 %v1105_v11, %v1095_v24  ;;  %v1131_v22 = vadd.f32 %v1130_v1, %v1120_v51  ;;  %v1127_v38 = vmul.f32 %v1101_v58, %v2397_v44  ;;  %v1150_v24 = vld [vmem:[%s2643_s2] sm:$0xff] }
 0x1bb   :  { %v1022_v5 = vpop.f32.mrf.mxu2 }
 0x1bc   :  { %v2399_v19 = vadd.f32 %v1036_v30, %v1022_v5  ;;  %1107 = vadd.xlane.f32.xlu1 %v1106_v36  ;;  %v1132_v45 = vadd.f32 %v1131_v22, %v1121_v7  ;;  %v1137_v30 = vadd.f32 %v1136_v49, %v1125_v40 }
 0x1be   :  { %v1100_v56 = vmul.f32 %v1088_v6, %v2399_v19  ;;  %1133 = vadd.xlane.f32.xlu0 %v1132_v45 }
 0x1c0   :  { %v1112_v2 = vadd.f32 %v1111_v57, %v1100_v56  ;;  %v1126_v25 = vmul.f32 %v1100_v56, %v2399_v19 }
 0x1c2   :  { %v1113_v37 = vadd.f32 %v1112_v2, %v1101_v58  ;;  %v1138_v46 = vadd.f32 %v1137_v30, %v1126_v25 }
 0x1c4   :  { %1114 = vadd.xlane.f32.xlu2 %v1113_v37  ;;  %v1139_v48 = vadd.f32 %v1138_v46, %v1127_v38 }
 0x1cc   :  { %1140 = vadd.xlane.f32.xlu2 %v1139_v48 }
 0x1d2   :  { %1214 = vperm.xlu0 %1780, %v1210_v35  }
 0x22f   :  { %v1108_v53 = vpop.xlane.xlu1 %1107 }
 0x230   :  { %v2410_v63 = vmul.f32 0.001953125, %v1108_v53 }
 0x231   :  { %v1134_v60 = vpop.xlane.xlu0 %1133 }
 0x232   :  { %v1144_v52 = vmul.f32 0.001953125, %v1134_v60  ;;  %v1146_v10 = vmul.f32 %v2410_v63, %v2410_v63  ;;  %v1176_v5 = vsub.f32 %v2361_v16, %v2410_v63  ;;  %v1177_v43 = vsub.f32 %v2359_v33, %v2410_v63 }
 0x233   :  { %v1178_v45 = vsub.f32 %v2364_v55, %v2410_v63  ;;  %v1179_v23 = vsub.f32 %v2368_v39, %v2410_v63  ;;  %v1180_v57 = vsub.f32 %v2385_v26, %v2410_v63  ;;  %v1181_v40 = vsub.f32 %v2379_v27, %v2410_v63 }
 0x234   :  { %v1148_v15 = vsub.f32 %v1144_v52, %v1146_v10 }
 0x236   :  { %v1152_v62 = vadd.f32 1e-05, %v1148_v15 }
 0x237   :  { %v1115_v0 = vpop.xlane.xlu2 %1114 }
 0x238   :  { %1791 = vrsqrt.f32 %v1152_v62  ;;  %v2414_v6 = vmul.f32 0.001953125, %v1115_v0  ;;  %vm1160_vm11 = vweird.f32 %v1152_v62 }
 0x23a   :  { %v1147_v28 = vmul.f32 %v2414_v6, %v2414_v6  ;;  %v1182_v56 = vsub.f32 %v2374_v61, %v2414_v6  ;;  %v1183_v55 = vsub.f32 %v2372_v59, %v2414_v6  ;;  %v1184_v39 = vsub.f32 %v2381_v8, %v2414_v6 }
 0x23b   :  { %v1185_v27 = vsub.f32 %v2387_v14, %v2414_v6  ;;  %v1186_v31 = vsub.f32 %v2399_v19, %v2414_v6  ;;  %v1187_v59 = vsub.f32 %v2397_v44, %v2414_v6 }
 0x23e   :  { %v1792_v13 = vpop.eup %1791 }
 0x23f   :  { %v1155_v3 = vmul.f32 %v1792_v13, %v1152_v62  ;;  %v1141_v29 = vpop.xlane.xlu2 %1140  ;;  %vm1161_vm10 = vweird.f32 %v1792_v13 }
 0x240   :  { %v1145_v20 = vmul.f32 0.001953125, %v1141_v29  ;;  %vm1162_vm12 = vmor %vm1160_vm11, %vm1161_vm10 }
 0x241   :  { %v1156_v9 = vmul.f32 %v1792_v13, %v1155_v3 }
 0x242   :  { %v1149_v54 = vsub.f32 %v1145_v20, %v1147_v28 }
 0x243   :  { %v1157_v34 = vmul.f32 0.5, %v1156_v9 }
 0x244   :  { %v1153_v21 = vadd.f32 1e-05, %v1149_v54  ;;  %v1215_v16 = vpop.permute.xlu0 %1214 }
 0x245   :  { %v1158_v18 = vsub.f32 1.5, %v1157_v34 }
 0x246   :  { %1793 = vrsqrt.f32 %v1153_v21  ;;  %vm1170_vm14 = vweird.f32 %v1153_v21 }
 0x247   :  { %v1159_v41 = vmul.f32 %v1792_v13, %v1158_v18 }
 0x249   :  { %v1163_v50 = vsel %vm1162_vm12, %v1792_v13, %v1159_v41 }
 0x24a   :  { %v1174_v42 = vmul.f32 %v1163_v50, %v1150_v24 }
 0x24c   :  { %v1794_v51 = vpop.eup %1793  ;;  %1190 = vperm.xlu1 %1778, %v1174_v42  }
 0x24d   :  { %v1165_v11 = vmul.f32 %v1794_v51, %v1153_v21  ;;  %vm1171_vm13 = vweird.f32 %v1794_v51 }
 0x24e   :  { %vm1172_vm15 = vmor %vm1170_vm14, %vm1171_vm13 }
 0x24f   :  { %v1166_v1 = vmul.f32 %v1794_v51, %v1165_v11 }
 0x251   :  { %v1167_v12 = vmul.f32 0.5, %v1166_v1 }
 0x253   :  { %v1168_v32 = vsub.f32 1.5, %v1167_v12 }
 0x254   :  { %1219 = vperm.xlu1 %1778, %v1211_v17  }
 0x255   :  { %v1169_v36 = vmul.f32 %v1794_v51, %v1168_v32 }
 0x257   :  { %v1173_v7 = vsel %vm1172_vm15, %v1794_v51, %v1169_v36 }
 0x258   :  { %v1175_v22 = vmul.f32 %v1173_v7, %v1151_v4 }
 0x25a   :  { %1195 = vperm.xlu2 %1779, %v1175_v22  }
 0x25c   :  { %1782 = vrot.lane.b32.xlu1 %v1804_v47, %s1798_s12 }
 0x2b4   :  { %v1196_v30 = vpop.permute.xlu2 %1195 }
 0x2b5   :  { %v1204_v52 = vmul.f32 %v1196_v30, %v1182_v56  ;;  %v1205_v10 = vmul.f32 %v1196_v30, %v1183_v55  ;;  %v1206_v14 = vmul.f32 %v1196_v30, %v1184_v39  ;;  %v1207_v0 = vmul.f32 %v1196_v30, %v1185_v27 }
 0x2b6   :  { %v1208_v44 = vmul.f32 %v1196_v30, %v1186_v31  ;;  %v1209_v6 = vmul.f32 %v1196_v30, %v1187_v59 }
 0x2be   :  { %v1191_v58 = vpop.permute.xlu1 %1190 }
 0x2bf   :  { %v1198_v2 = vmul.f32 %v1191_v58, %v1176_v5  ;;  %v1199_v49 = vmul.f32 %v1191_v58, %v1177_v43  ;;  %v1200_v33 = vmul.f32 %v1191_v58, %v1178_v45  ;;  %v1201_v25 = vmul.f32 %v1191_v58, %v1179_v23 }
 0x2c0   :  { %v1202_v37 = vmul.f32 %v1191_v58, %v1180_v57  ;;  %v1203_v61 = vmul.f32 %v1191_v58, %v1181_v40 }
 0x2c1   :  { %v1222_v46 = vadd.f32 %v1215_v16, %v1198_v2  ;;  %v1223_v26 = vadd.f32 %v1215_v16, %v1199_v49  ;;  %v1224_v38 = vadd.f32 %v1215_v16, %v1200_v33  ;;  %v1225_v48 = vadd.f32 %v1215_v16, %v1201_v25 }
 0x2c2   :  { %v1226_v53 = vadd.f32 %v1215_v16, %v1202_v37  ;;  %v1227_v35 = vadd.f32 %v1215_v16, %v1203_v61 }
 0x2c3   :  { %v2464_v63 = vmax.f32 %v1222_v46, 0.0  ;;  %v2466_v8 = vmax.f32 %v1223_v26, 0.0  ;;  %v2468_v60 = vmax.f32 %v1224_v38, 0.0  ;;  %v2470_v15 = vmax.f32 %v1225_v48, 0.0 }
 0x2c4   :  { %v2472_v62 = vmax.f32 %v1227_v35, 0.0  ;;  %v2474_v19 = vmax.f32 %v1226_v53, 0.0 }
 0x2c5   :  { %1250 = vst [vmem:[%s2644_s5 + $0x8] sm:$0xff] %v2464_v63  ;;  %1304 = vrot.lane.b32.xlu1 %v2466_v8, %s1798_s12  ;;  %1302 = vrot.lane.b32.xlu2 %v2464_v63, %s1798_s12 }
 0x2c6   :  { %1251 = vst [vmem:[%s2644_s5 + $0x10] sm:$0xff] %v2466_v8  ;;  %v1220_v13 = vpop.permute.xlu1 %1219  ;;  %1312 = vrot.lane.b32.xlu0 %v2472_v62, %s1798_s12 }
 0x2c7   :  { %1252 = vst [vmem:[%s2644_s5 + $0x18] sm:$0xff] %v2468_v60  ;;  %v1228_v3 = vadd.f32 %v1220_v13, %v1204_v52  ;;  %v1229_v29 = vadd.f32 %v1220_v13, %v1205_v10  ;;  %v1230_v28 = vadd.f32 %v1220_v13, %v1206_v14  ;;  %v1231_v20 = vadd.f32 %v1220_v13, %v1207_v0 }
 0x2c8   :  { %1253 = vst [vmem:[%s2644_s5 + $0x20] sm:$0xff] %v2470_v15  ;;  %v1232_v9 = vadd.f32 %v1220_v13, %v1208_v44  ;;  %v1233_v54 = vadd.f32 %v1220_v13, %v1209_v6 }
 0x2c9   :  { %1254 = vst [vmem:[%s2644_s5 + $0x28] sm:$0xff] %v2474_v19  ;;  %v1240_v34 = vmax.f32 %v1228_v3, 0.0  ;;  %v2502_v21 = vmax.f32 %v1229_v29, 0.0  ;;  %v1242_v18 = vmax.f32 %v1230_v28, 0.0  ;;  %v2508_v24 = vmax.f32 %v1231_v20, 0.0 }
 0x2ca   :  { %1255 = vst [vmem:[%s2644_s5 + $0x30] sm:$0xff] %v2472_v62  ;;  %v2510_v41 = vmax.f32 %v1232_v9, 0.0  ;;  %v2515_v50 = vmax.f32 %v1233_v54, 0.0 }
 0x2cb   :  { %1256 = vst [vmem:[%s2644_s5 + $0x48] sm:$0xff] %v1240_v34 }
 0x2cc   :  { %1257 = vst [vmem:[%s2644_s5 + $0x50] sm:$0xff] %v2502_v21 }
 0x2cd   :  { %1258 = vst [vmem:[%s2644_s5 + $0x58] sm:$0xff] %v1242_v18  ;;  %1308 = vrot.lane.b32.xlu1 %v2470_v15, %s1798_s12  ;;  %1306 = vrot.lane.b32.xlu2 %v2468_v60, %s1798_s12 }
 0x2ce   :  { %1259 = vst [vmem:[%s2644_s5 + $0x60] sm:$0xff] %v2508_v24  ;;  %1318 = vrot.lane.b32.xlu0 %v2502_v21, %s1798_s12  ;;  %v1783_v42 = vpop.permute.xlu1 %1782 }
 0x2cf   :  { %1260 = vst [vmem:[%s2644_s5 + $0x68] sm:$0xff] %v2510_v41  ;;  %v1785_v51 = vunpack.i.h.bf16 %v1783_v42  ;;  %v1784_v11 = vunpack.i.l.bf16 %v1783_v42 }
 0x2d0   :  { %1261 = vst [vmem:[%s2644_s5 + $0x70] sm:$0xff] %v2515_v50 }
 0x2d1   :  { %v1382_v1 = vmax.f32 %v1785_v51, 0.0  ;;  %v1375_v12 = vmax.f32 %v1784_v11, 0.0 }
 0x2d3   :  { %v1786_v17 = vpack.i.bf16 %v1382_v1, %v1375_v12 }
 0x2d5   :  { %1310 = vrot.lane.b32.xlu2 %v2474_v19, %s1798_s12  ;;  %1320 = vrot.lane.b32.xlu1 %v1242_v18, %s1798_s12 }
 0x2d6   :  { %1324 = vrot.lane.b32.xlu0 %v2510_v41, %s1798_s12 }
 0x2dd   :  { %1326 = vrot.lane.b32.xlu1 %v2515_v50, %s1798_s12  ;;  %1316 = vrot.lane.b32.xlu2 %v1240_v34, %s1798_s12 }
 0x2e5   :  { %1322 = vrot.lane.b32.xlu2 %v2508_v24, %s1798_s12 }
 0x2ed   :  { %1787 = vrot.lane.b32.xlu2 %v1786_v17, %s1796_s28 }
 0x31f   :  { %v1303_v32 = vpop.permute.xlu2 %1302 }
 0x327   :  { %v1307_v4 = vpop.permute.xlu2 %1306 }
 0x32f   :  { %v1311_v36 = vpop.permute.xlu2 %1310 }
 0x337   :  { %v1305_v7 = vpop.permute.xlu1 %1304  ;;  %v1317_v23 = vpop.permute.xlu2 %1316 }
 0x338   :  { %v1313_v22 = vpop.permute.xlu0 %1312  ;;  %v1331_v47 = vsel %vm341_vm4, %v1303_v32, %v1305_v7  ;;  %v1332_v5 = vsel %vm341_vm4, %v1305_v7, %v1307_v4 }
 0x339   :  { %v1355_v43 = vmax.f32 %v2464_v63, %v1331_v47  ;;  %v1356_v45 = vmax.f32 %v2466_v8, %v1332_v5  ;;  %v1335_v56 = vsel %vm341_vm4, %v1311_v36, %v1313_v22  ;;  %v1336_v25 = vsel %vm341_vm4, %v1313_v22, %v1784_v11 }
 0x33a   :  { %v2563_v16 = vmax.f32 %v2474_v19, %v1335_v56  ;;  %v1360_v30 = vmax.f32 %v2472_v62, %v1336_v25 }
 0x33b   :  { %1397 = vrot.lane.b32.xlu2 %v1355_v43, %s1796_s28  ;;  %1399 = vrot.lane.b32.xlu0 %v1356_v45, %s1796_s28 }
 0x33f   :  { %v1309_v57 = vpop.permute.xlu1 %1308  ;;  %v1323_v39 = vpop.permute.xlu2 %1322 }
 0x340   :  { %v1333_v40 = vsel %vm341_vm4, %v1307_v4, %v1309_v57  ;;  %v1334_v58 = vsel %vm341_vm4, %v1309_v57, %v1311_v36  ;;  %v1319_v33 = vpop.permute.xlu0 %1318 }
 0x341   :  { %v1357_v2 = vmax.f32 %v2468_v60, %v1333_v40  ;;  %v1358_v49 = vmax.f32 %v2470_v15, %v1334_v58  ;;  %v1337_v55 = vsel %vm341_vm4, %v1317_v23, %v1319_v33 }
 0x342   :  { %v1361_v46 = vmax.f32 %v1240_v34, %v1337_v55 }
 0x343   :  { %1401 = vrot.lane.b32.xlu1 %v1357_v2, %s1796_s28  ;;  %1405 = vrot.lane.b32.xlu0 %v2563_v16, %s1796_s28 }
 0x344   :  { %1403 = vrot.lane.b32.xlu2 %v1358_v49, %s1796_s28 }
 0x347   :  { %v1321_v37 = vpop.permute.xlu1 %1320  ;;  %v1788_v52 = vpop.permute.xlu2 %1787 }
 0x348   :  { %v1339_v61 = vsel %vm341_vm4, %v1321_v37, %v1323_v39  ;;  %v1325_v38 = vpop.permute.xlu0 %1324  ;;  %v1338_v48 = vsel %vm341_vm4, %v1319_v33, %v1321_v37  ;;  %v1790_v14 = vunpack.i.h.bf16 %v1788_v52 }
 0x349   :  { %v1363_v26 = vmax.f32 %v1242_v18, %v1339_v61  ;;  %v1340_v27 = vsel %vm341_vm4, %v1323_v39, %v1325_v38  ;;  %v1362_v35 = vmax.f32 %v2502_v21, %v1338_v48 }
 0x34a   :  { %v1364_v59 = vmax.f32 %v2508_v24, %v1340_v27  ;;  %v1789_v24 = vunpack.i.l.bf16 %v1788_v52 }
 0x34b   :  { %1407 = vrot.lane.b32.xlu1 %v1360_v30, %s1796_s28  ;;  %1411 = vrot.lane.b32.xlu0 %v1361_v46, %s1796_s28 }
 0x34c   :  { %1415 = vrot.lane.b32.xlu2 %v1363_v26, %s1796_s28 }
 0x34f   :  { %v1327_v31 = vpop.permute.xlu1 %1326 }
 0x350   :  { %v1342_v53 = vsel %vm341_vm4, %v1327_v31, %v1785_v51  ;;  %v1341_v8 = vsel %vm341_vm4, %v1325_v38, %v1327_v31 }
 0x351   :  { %v1366_v63 = vmax.f32 %v2515_v50, %v1342_v53  ;;  %v1365_v60 = vmax.f32 %v2510_v41, %v1341_v8 }
 0x353   :  { %1413 = vrot.lane.b32.xlu1 %v1362_v35, %s1796_s28  ;;  %1417 = vrot.lane.b32.xlu0 %v1364_v59, %s1796_s28 }
 0x354   :  { %1421 = vrot.lane.b32.xlu2 %v1366_v63, %s1796_s28 }
 0x35b   :  { %1419 = vrot.lane.b32.xlu1 %v1365_v60, %s1796_s28 }
 0x395   :  { %v1398_v10 = vpop.permute.xlu2 %1397 }
 0x39e   :  { %v1404_v15 = vpop.permute.xlu2 %1403 }
 0x3a6   :  { %v1416_v62 = vpop.permute.xlu2 %1415 }
 0x3ad   :  { %v1400_v0 = vpop.permute.xlu0 %1399 }
 0x3ae   :  { %v1426_v19 = vsel %vm471_vm2, %v1398_v10, %v1400_v0  ;;  %v1422_v44 = vpop.permute.xlu2 %1421 }
 0x3af   :  { %v1450_v6 = vmax.f32 %v1355_v43, %v1426_v19  ;;  %v1437_v13 = vsel %vm471_vm2, %v1422_v44, %v1790_v14 }
 0x3b0   :  { %v1461_v3 = vmax.f32 %v1366_v63, %v1437_v13 }
 0x3b1   :  { %1462 = vst [vmem:[%s2645_s6] sm:$0xff] %v1450_v6 }
 0x3b2   :  { %1473 = vst [vmem:[%s2645_s6 + $0x58] sm:$0xff] %v1461_v3 }
 0x3b5   :  { %v1402_v29 = vpop.permute.xlu1 %1401  ;;  %v1406_v28 = vpop.permute.xlu0 %1405 }
 0x3b6   :  { %v1427_v20 = vsel %vm471_vm2, %v1400_v0, %v1402_v29  ;;  %v1428_v9 = vsel %vm471_vm2, %v1402_v29, %v1404_v15  ;;  %v1429_v54 = vsel %vm471_vm2, %v1404_v15, %v1406_v28 }
 0x3b7   :  { %v1451_v34 = vmax.f32 %v1356_v45, %v1427_v20  ;;  %v1452_v21 = vmax.f32 %v1357_v2, %v1428_v9  ;;  %v1453_v18 = vmax.f32 %v1358_v49, %v1429_v54 }
 0x3b9   :  { %1463 = vst [vmem:[%s2645_s6 + $0x8] sm:$0xff] %v1451_v34 }
 0x3ba   :  { %1464 = vst [vmem:[%s2645_s6 + $0x10] sm:$0xff] %v1452_v21 }
 0x3bb   :  { %1465 = vst [vmem:[%s2645_s6 + $0x18] sm:$0xff] %v1453_v18 }
 0x3bd   :  { %v1408_v41 = vpop.permute.xlu1 %1407  ;;  %v1412_v50 = vpop.permute.xlu0 %1411 }
 0x3be   :  { %v1430_v42 = vsel %vm471_vm2, %v1406_v28, %v1408_v41  ;;  %v1431_v51 = vsel %vm471_vm2, %v1408_v41, %v1789_v24 }
 0x3bf   :  { %v1454_v11 = vmax.f32 %v2563_v16, %v1430_v42  ;;  %v1455_v1 = vmax.f32 %v1360_v30, %v1431_v51 }
 0x3c1   :  { %1466 = vst [vmem:[%s2645_s6 + $0x20] sm:$0xff] %v1454_v11 }
 0x3c2   :  { %1467 = vst [vmem:[%s2645_s6 + $0x28] sm:$0xff] %v1455_v1 }
 0x3c5   :  { %v1414_v12 = vpop.permute.xlu1 %1413  ;;  %v1418_v17 = vpop.permute.xlu0 %1417 }
 0x3c6   :  { %v1432_v32 = vsel %vm471_vm2, %v1412_v50, %v1414_v12  ;;  %v1433_v4 = vsel %vm471_vm2, %v1414_v12, %v1416_v62  ;;  %v1434_v36 = vsel %vm471_vm2, %v1416_v62, %v1418_v17 }
 0x3c7   :  { %v1456_v7 = vmax.f32 %v1361_v46, %v1432_v32  ;;  %v1457_v22 = vmax.f32 %v1362_v35, %v1433_v4  ;;  %v1458_v47 = vmax.f32 %v1363_v26, %v1434_v36 }
 0x3c9   :  { %1468 = vst [vmem:[%s2645_s6 + $0x30] sm:$0xff] %v1456_v7 }
 0x3ca   :  { %1469 = vst [vmem:[%s2645_s6 + $0x38] sm:$0xff] %v1457_v22 }
 0x3cb   :  { %1470 = vst [vmem:[%s2645_s6 + $0x40] sm:$0xff] %v1458_v47 }
 0x3cd   :  { %v1420_v5 = vpop.permute.xlu1 %1419 }
 0x3ce   :  { %v1435_v43 = vsel %vm471_vm2, %v1418_v17, %v1420_v5  ;;  %v1436_v45 = vsel %vm471_vm2, %v1420_v5, %v1422_v44 }
 0x3cf   :  { %v1459_v23 = vmax.f32 %v1364_v59, %v1435_v43  ;;  %v1460_v56 = vmax.f32 %v1365_v60, %v1436_v45 }
 0x3d1   :  { %1471 = vst [vmem:[%s2645_s6 + $0x48] sm:$0xff] %v1459_v23 }
 0x3d2   :  { %1472 = vst [vmem:[%s2645_s6 + $0x50] sm:$0xff] %v1460_v56 }

</bundles_post_ra>
